<compile_context>
chip_gen: v6e
topology: v6e:2x2x1
jax: 0.10.0
libtpu: 0.0.40
codegen_flags: <defaults>
</compile_context>

<pallas_src>
import functools

import jax
import jax.numpy as jnp
from jax import lax
from jax.experimental import pallas as pl
from jax.experimental.pallas import tpu as pltpu


def _cpe_kernel(xb_ref, xtop_ref, xbot_ref, w_ref, b_ref, o_ref, *,
                TH, W, CT, K, RC):
    # xb_ref  : (1, TH, W, CT)  body rows of this tile (unpadded input)
    # xtop_ref: (1, 1,  W, CT)  row just above the tile (clamped; zero-gated at r==0)
    # xbot_ref: (1, 1,  W, CT)  row just below the tile (clamped; zero-gated at r==last)
    # w_ref   : (K*K, CT)       depthwise taps, tap index t = kh*K + kw
    # b_ref   : (1, CT)         bias
    # o_ref   : (1, TH, W, CT)
    pad = K // 2
    r = pl.program_id(2)          # row-tile axis is innermost
    nr = pl.num_programs(2)

    wf = w_ref[...].astype(jnp.float32)        # (K*K, CT), hoisted
    bias = b_ref[0].astype(jnp.float32)        # (CT,)

    # Halo rows, zero-gated when the tile touches the image boundary (== zero pad).
    top = jnp.where(r > 0, xtop_ref[0, 0], 0)          # (W, CT), input dtype
    bot = jnp.where(r < nr - 1, xbot_ref[0, 0], 0)     # (W, CT)

    in_dtype = xb_ref.dtype
    zrow = jnp.zeros((1, CT), in_dtype)

    def col_shift_row(v):            # v: (W, CT) -> (v[j-1], v[j+1]) with zero pad
        if W == 1:
            return zrow, zrow
        west = jnp.concatenate([zrow, v[:W - 1]], axis=0)
        east = jnp.concatenate([v[1:], zrow], axis=0)
        return west, east

    def col_shift_chunk(v):          # v: (RC, W, CT)
        z = jnp.zeros((RC, 1, CT), in_dtype)
        if W == 1:
            return z, z
        west = jnp.concatenate([z, v[:, :W - 1, :]], axis=1)
        east = jnp.concatenate([v[:, 1:, :], z], axis=1)
        return west, east

    def taps_row(v, vw, ve, kh):     # (W, CT) -> f32 (W, CT)
        return (vw * wf[kh * K + 0][None, :]
                + v * wf[kh * K + 1][None, :]
                + ve * wf[kh * K + 2][None, :])

    def taps_chunk(v, vw, ve, kh):   # (RC, W, CT) -> f32
        return (vw * wf[kh * K + 0][None, None, :]
                + v * wf[kh * K + 1][None, None, :]
                + ve * wf[kh * K + 2][None, None, :])

    n_chunks = TH // RC
    for ci in range(n_chunks):       # static unroll; bounded (<= 8) by the wrapper
        h0 = ci * RC
        center = xb_ref[0, pl.ds(h0, RC)]                       # (RC, W, CT)
        above = top if ci == 0 else xb_ref[0, h0 - 1]           # (W, CT)
        below = bot if ci == n_chunks - 1 else xb_ref[0, h0 + RC]

        c_w, c_e = col_shift_chunk(center)      # only 2 shifted copies per chunk
        a_w, a_e = col_shift_row(above)
        b_w, b_e = col_shift_row(below)

        # Middle kernel row + residual + bias fused into the accumulator seed.
        acc = (center * (1.0 + wf[pad * K + pad])[None, None, :]
               + c_w * wf[pad * K + 0][None, None, :]
               + c_e * wf[pad * K + 2][None, None, :]
               + bias[None, None, :])

        # Kernel row above (kh=0): output row j takes source row j-1.
        p_up = taps_chunk(center, c_w, c_e, 0)   # center[j] -> contributes to row j+1
        r_up = taps_row(above, a_w, a_e, 0)      # -> output row 0 of this chunk
        up = r_up[None] if RC == 1 else jnp.concatenate(
            [r_up[None], p_up[:RC - 1]], axis=0)

        # Kernel row below (kh=2): output row j takes source row j+1.
        p_dn = taps_chunk(center, c_w, c_e, 2)
        r_dn = taps_row(below, b_w, b_e, 2)      # -> last output row of this chunk
        dn = r_dn[None] if RC == 1 else jnp.concatenate(
            [p_dn[1:], r_dn[None]], axis=0)

        # Exactly one store per chunk.
        o_ref[0, pl.ds(h0, RC)] = (acc + up + dn).astype(o_ref.dtype)


def _pick_chunk_rows(th, row_bytes_f32, target_bytes=32 * 1024, max_chunks=8):
    """Largest divisor of `th` whose f32 chunk fits a vreg-friendly byte target,
    floored so the static chunk unroll never exceeds `max_chunks`."""
    divisors = [d for d in range(1, th + 1) if th % d == 0]
    rc = 1
    for d in reversed(divisors):
        if d * row_bytes_f32 <= target_bytes:
            rc = d
            break
    min_rc = -(-th // max_chunks)
    for d in divisors:
        if d >= min_rc:
            min_rc = d
            break
    return max(rc, min_rc)


def conv_pos_enc(x, size, weight, bias, *, k=3, block_rows=None, chunk_rows=None,
                 vmem_budget_bytes=None):
    """x: (B, N, C); size=(H, W); weight: (C, 1, k, k); bias: (C,) -> (B, N, C)."""
    B, N, C = x.shape
    H, W = size
    assert N == H * W
    assert k == 3, "kernel is specialized for k=3 (pad=1)"

    # ----- layout glue: reshape only, no host-side padding / copies -----
    x_nhwc = x.reshape(B, H, W, C)                                   # (B,H,W,C)
    # depthwise taps as (k*k, C): w_taps[kh*k + kw, c] = weight[c, 0, kh, kw]
    w_taps = jnp.transpose(weight[:, 0, :, :], (1, 2, 0)).reshape(k * k, C)
    b_row = bias.reshape(1, C)

    # ----- channel tiling: 128-lane-dense tiles when possible -----
    ct = 128 if C % 128 == 0 else C
    nc = C // ct
    # TODO(synk): for C not a multiple of 128, fold W into the lane axis for
    #   lane-dense stores (currently lanes are under-filled for small C).

    itemsize = jnp.dtype(x.dtype).itemsize

    # ----- generation-aware VMEM sizing -----
    try:
        vmem_cap = int(pltpu.get_tpu_info().vmem_capacity_bytes)
    except Exception:
        vmem_cap = 64 * 1024 * 1024            # conservative fallback (v7x-sized)
    if vmem_budget_bytes is None:
        # Body-block budget; real footprint ~4-5x (double-buffered in/out + halos
        # + chunk-sized f32 temporaries), so keep headroom under the scoped limit.
        vmem_budget_bytes = max(1 << 20, min(vmem_cap // 12, 12 << 20))
    vmem_limit = max(32 << 20, min(vmem_cap * 3 // 4, 100 << 20))

    # ----- row tiling: biggest divisor of H whose body block fits the budget -----
    row_bytes = W * ct * itemsize
    if block_rows is None:
        th = 1
        for cand in range(1, H + 1):
            if H % cand == 0 and cand * row_bytes <= vmem_budget_bytes:
                th = cand
    else:
        assert H % block_rows == 0
        th = block_rows
    nr = H // th

    # ----- in-kernel row chunking (keeps the f32 accumulator vreg-resident) -----
    if chunk_rows is None:
        rc = _pick_chunk_rows(th, W * ct * 4)
    else:
        assert th % chunk_rows == 0
        rc = chunk_rows

    kernel = functools.partial(_cpe_kernel, TH=th, W=W, CT=ct, K=k, RC=rc)

    # Grid (B, channel-tiles, row-tiles): rows innermost -> weight/bias blocks are
    # re-used across the inner loop and body/output streams are row-contiguous.
    body_spec = pl.BlockSpec((1, th, W, ct), lambda b, c, r: (b, r, 0, c))
    # 1-row halo blocks: block size 1 along H => block index == row index.
    top_spec = pl.BlockSpec(
        (1, 1, W, ct), lambda b, c, r: (b, jnp.maximum(r * th - 1, 0), 0, c))
    bot_spec = pl.BlockSpec(
        (1, 1, W, ct), lambda b, c, r: (b, jnp.minimum((r + 1) * th, H - 1), 0, c))

    out = pl.pallas_call(
        kernel,
        out_shape=jax.ShapeDtypeStruct((B, H, W, C), x.dtype),
        grid_spec=pltpu.PrefetchScalarGridSpec(
            num_scalar_prefetch=0,
            grid=(B, nc, nr),
            in_specs=[
                body_spec,
                top_spec,
                bot_spec,
                pl.BlockSpec((k * k, ct), lambda b, c, r: (0, c)),
                pl.BlockSpec((1, ct), lambda b, c, r: (0, c)),
            ],
            out_specs=pl.BlockSpec((1, th, W, ct), lambda b, c, r: (b, r, 0, c)),
        ),
        compiler_params=pltpu.CompilerParams(
            dimension_semantics=("parallel", "parallel", "parallel"),
            vmem_limit_bytes=int(vmem_limit)),
    )(x_nhwc, x_nhwc, x_nhwc, w_taps, b_row)

    return out.reshape(B, N, C)


def conv_pos_enc_ref(x, size, weight, bias, *, k=3):
    """Pure-JAX reference matching the PyTorch module."""
    B, N, C = x.shape
    H, W = size
    feat = jnp.transpose(x, (0, 2, 1)).reshape(B, C, H, W)           # NCHW
    conv = lax.conv_general_dilated(
        feat, weight,
        window_strides=(1, 1),
        padding=[(k // 2, k // 2), (k // 2, k // 2)],
        dimension_numbers=("NCHW", "OIHW", "NCHW"),
        feature_group_count=C,
    ) + bias[None, :, None, None]
    out = conv + feat
    return jnp.transpose(out.reshape(B, C, H * W), (0, 2, 1))


if __name__ == "__main__":
    B, C, H, W = 2, 4, 16, 16
    k = 3
    N = H * W

    key = jax.random.PRNGKey(0)
    kx, kw_, kb = jax.random.split(key, 3)
    x = jax.random.normal(kx, (B, N, C), dtype=jnp.float32)
    weight = jax.random.normal(kw_, (C, 1, k, k), dtype=jnp.float32) * 0.1
    bias = jax.random.normal(kb, (C,), dtype=jnp.float32) * 0.1

    ref = conv_pos_enc_ref(x, (H, W), weight, bias, k=k)

    # Default tiling (whole image per row tile at this toy size; single chunk).
    out = conv_pos_enc(x, (H, W), weight, bias, k=k)
    jax.block_until_ready(out)
    assert out.shape == (B, N, C)
    assert jnp.allclose(out, ref, atol=1e-5, rtol=1e-5), "mismatch (default tiling)"

    # Row-tiled path: exercises the inter-tile halo handling (2 row tiles).
    out_tiled = conv_pos_enc(x, (H, W), weight, bias, k=k, block_rows=8)
    jax.block_until_ready(out_tiled)
    assert jnp.allclose(out_tiled, ref, atol=1e-5, rtol=1e-5), "mismatch (row tiled)"

    # Row-tiled + in-kernel chunking: exercises halos AND intra-tile chunk edges.
    out_chunked = conv_pos_enc(x, (H, W), weight, bias, k=k,
                               block_rows=8, chunk_rows=2)
    jax.block_until_ready(out_chunked)
    assert jnp.allclose(out_chunked, ref, atol=1e-5, rtol=1e-5), "mismatch (chunked)"

    print("KERNEL_OK")
</pallas_src>

<mosaic_0001>
module attributes {stable_mosaic.version = 11 : i64} {
  func.func @_cpe_kernel(%arg0: i32, %arg1: i32, %arg2: i32, %arg3: memref<1x16x16x4xf32, #tpu.memory_space<vmem>>, %arg4: memref<1x1x16x4xf32, #tpu.memory_space<vmem>>, %arg5: memref<1x1x16x4xf32, #tpu.memory_space<vmem>>, %arg6: memref<9x4xf32, #tpu.memory_space<vmem>>, %arg7: memref<1x4xf32, #tpu.memory_space<vmem>>, %arg8: memref<1x16x16x4xf32, #tpu.memory_space<vmem>>) attributes {dimension_semantics = [#tpu.dimension_semantics<parallel>, #tpu.dimension_semantics<parallel>, #tpu.dimension_semantics<parallel>], iteration_bounds = array<i64: 2, 1, 1>, scalar_prefetch = 0 : i64, scratch_operands = 0 : i64, tpu.core_type = #tpu.core_type<tc>, window_params = [{transform_indices = @transform_0, window_bounds = array<i64: 1, 16, 16, 4>}, {transform_indices = @transform_1, window_bounds = array<i64: 1, 1, 16, 4>}, {transform_indices = @transform_2, window_bounds = array<i64: 1, 1, 16, 4>}, {transform_indices = @transform_3, window_bounds = array<i64: 9, 4>}, {transform_indices = @transform_4, window_bounds = array<i64: 1, 4>}, {transform_indices = @transform_5, window_bounds = array<i64: 1, 16, 16, 4>}]} {
    %c0 = arith.constant 0 : index
    %c0_0 = arith.constant 0 : index
    %0 = vector.load %arg6[%c0, %c0_0] : memref<9x4xf32, #tpu.memory_space<vmem>>, vector<9x4xf32>
    %c0_1 = arith.constant 0 : index
    %c0_2 = arith.constant 0 : index
    %1 = vector.load %arg7[%c0_1, %c0_2] : memref<1x4xf32, #tpu.memory_space<vmem>>, vector<1x4xf32>
    %2 = vector.shape_cast %1 : vector<1x4xf32> to vector<4xf32>
    %c0_i32 = arith.constant 0 : i32
    %3 = arith.cmpi sgt, %arg2, %c0_i32 : i32
    %c0_3 = arith.constant 0 : index
    %c0_4 = arith.constant 0 : index
    %c0_5 = arith.constant 0 : index
    %c0_6 = arith.constant 0 : index
    %4 = vector.load %arg4[%c0_3, %c0_4, %c0_5, %c0_6] : memref<1x1x16x4xf32, #tpu.memory_space<vmem>>, vector<1x1x16x4xf32>
    %5 = vector.shape_cast %4 : vector<1x1x16x4xf32> to vector<16x4xf32>
    %c0_i32_7 = arith.constant 0 : i32
    %6 = arith.sitofp %c0_i32_7 : i32 to f32
    %7 = vector.broadcast %6 : f32 to vector<16x4xf32>
    %8 = arith.select %3, %5, %7 : vector<16x4xf32>
    %c0_i32_8 = arith.constant 0 : i32
    %9 = arith.cmpi slt, %arg2, %c0_i32_8 : i32
    %c0_9 = arith.constant 0 : index
    %c0_10 = arith.constant 0 : index
    %c0_11 = arith.constant 0 : index
    %c0_12 = arith.constant 0 : index
    %10 = vector.load %arg5[%c0_9, %c0_10, %c0_11, %c0_12] : memref<1x1x16x4xf32, #tpu.memory_space<vmem>>, vector<1x1x16x4xf32>
    %11 = vector.shape_cast %10 : vector<1x1x16x4xf32> to vector<16x4xf32>
    %c0_i32_13 = arith.constant 0 : i32
    %12 = arith.sitofp %c0_i32_13 : i32 to f32
    %13 = vector.broadcast %12 : f32 to vector<16x4xf32>
    %14 = arith.select %9, %11, %13 : vector<16x4xf32>
    %cst = arith.constant 0.000000e+00 : f32
    %15 = vector.broadcast %cst : f32 to vector<1x4xf32>
    %c0_14 = arith.constant 0 : index
    %c0_15 = arith.constant 0 : index
    %c0_16 = arith.constant 0 : index
    %c0_17 = arith.constant 0 : index
    %16 = vector.load %arg3[%c0_14, %c0_15, %c0_16, %c0_17] : memref<1x16x16x4xf32, #tpu.memory_space<vmem>>, vector<1x16x16x4xf32>
    %17 = vector.shape_cast %16 : vector<1x16x16x4xf32> to vector<16x16x4xf32>
    %cst_18 = arith.constant 0.000000e+00 : f32
    %18 = vector.broadcast %cst_18 : f32 to vector<16x1x4xf32>
    %19 = vector.extract_strided_slice %17 {offsets = [0, 0, 0], sizes = [16, 15, 4], strides = [1, 1, 1]} : vector<16x16x4xf32> to vector<16x15x4xf32>
    %20 = tpu.concatenate %18, %19 in 1 : vector<16x1x4xf32>, vector<16x15x4xf32> -> vector<16x16x4xf32>
    %21 = vector.extract_strided_slice %17 {offsets = [0, 1, 0], sizes = [16, 15, 4], strides = [1, 1, 1]} : vector<16x16x4xf32> to vector<16x15x4xf32>
    %22 = tpu.concatenate %21, %18 in 1 : vector<16x15x4xf32>, vector<16x1x4xf32> -> vector<16x16x4xf32>
    %23 = vector.extract_strided_slice %8 {offsets = [0, 0], sizes = [15, 4], strides = [1, 1]} : vector<16x4xf32> to vector<15x4xf32>
    %24 = tpu.concatenate %15, %23 in 0 : vector<1x4xf32>, vector<15x4xf32> -> vector<16x4xf32>
    %25 = vector.extract_strided_slice %8 {offsets = [1, 0], sizes = [15, 4], strides = [1, 1]} : vector<16x4xf32> to vector<15x4xf32>
    %26 = tpu.concatenate %25, %15 in 0 : vector<15x4xf32>, vector<1x4xf32> -> vector<16x4xf32>
    %27 = vector.extract_strided_slice %14 {offsets = [0, 0], sizes = [15, 4], strides = [1, 1]} : vector<16x4xf32> to vector<15x4xf32>
    %28 = tpu.concatenate %15, %27 in 0 : vector<1x4xf32>, vector<15x4xf32> -> vector<16x4xf32>
    %29 = vector.extract_strided_slice %14 {offsets = [1, 0], sizes = [15, 4], strides = [1, 1]} : vector<16x4xf32> to vector<15x4xf32>
    %30 = tpu.concatenate %29, %15 in 0 : vector<15x4xf32>, vector<1x4xf32> -> vector<16x4xf32>
    %31 = vector.extract_strided_slice %0 {offsets = [4, 0], sizes = [1, 4], strides = [1, 1]} : vector<9x4xf32> to vector<1x4xf32>
    %32 = vector.shape_cast %31 : vector<1x4xf32> to vector<4xf32>
    %cst_19 = arith.constant 1.000000e+00 : f32
    %33 = vector.broadcast %cst_19 : f32 to vector<4xf32>
    %34 = arith.addf %33, %32 : vector<4xf32>
    %35 = vector.shape_cast %34 : vector<4xf32> to vector<1x1x4xf32>
    %36 = vector.broadcast %35 : vector<1x1x4xf32> to vector<16x16x4xf32>
    %37 = arith.mulf %17, %36 : vector<16x16x4xf32>
    %38 = vector.extract_strided_slice %0 {offsets = [3, 0], sizes = [1, 4], strides = [1, 1]} : vector<9x4xf32> to vector<1x4xf32>
    %39 = vector.shape_cast %38 : vector<1x4xf32> to vector<4xf32>
    %40 = vector.shape_cast %39 : vector<4xf32> to vector<1x1x4xf32>
    %41 = vector.broadcast %40 : vector<1x1x4xf32> to vector<16x16x4xf32>
    %42 = arith.mulf %20, %41 : vector<16x16x4xf32>
    %43 = arith.addf %37, %42 : vector<16x16x4xf32>
    %44 = vector.extract_strided_slice %0 {offsets = [5, 0], sizes = [1, 4], strides = [1, 1]} : vector<9x4xf32> to vector<1x4xf32>
    %45 = vector.shape_cast %44 : vector<1x4xf32> to vector<4xf32>
    %46 = vector.shape_cast %45 : vector<4xf32> to vector<1x1x4xf32>
    %47 = vector.broadcast %46 : vector<1x1x4xf32> to vector<16x16x4xf32>
    %48 = arith.mulf %22, %47 : vector<16x16x4xf32>
    %49 = arith.addf %43, %48 : vector<16x16x4xf32>
    %50 = vector.shape_cast %2 : vector<4xf32> to vector<1x1x4xf32>
    %51 = vector.broadcast %50 : vector<1x1x4xf32> to vector<16x16x4xf32>
    %52 = arith.addf %49, %51 : vector<16x16x4xf32>
    %53 = vector.extract_strided_slice %0 {offsets = [0, 0], sizes = [1, 4], strides = [1, 1]} : vector<9x4xf32> to vector<1x4xf32>
    %54 = vector.shape_cast %53 : vector<1x4xf32> to vector<4xf32>
    %55 = vector.shape_cast %54 : vector<4xf32> to vector<1x1x4xf32>
    %56 = vector.broadcast %55 : vector<1x1x4xf32> to vector<16x16x4xf32>
    %57 = arith.mulf %20, %56 : vector<16x16x4xf32>
    %58 = vector.extract_strided_slice %0 {offsets = [1, 0], sizes = [1, 4], strides = [1, 1]} : vector<9x4xf32> to vector<1x4xf32>
    %59 = vector.shape_cast %58 : vector<1x4xf32> to vector<4xf32>
    %60 = vector.shape_cast %59 : vector<4xf32> to vector<1x1x4xf32>
    %61 = vector.broadcast %60 : vector<1x1x4xf32> to vector<16x16x4xf32>
    %62 = arith.mulf %17, %61 : vector<16x16x4xf32>
    %63 = arith.addf %57, %62 : vector<16x16x4xf32>
    %64 = vector.extract_strided_slice %0 {offsets = [2, 0], sizes = [1, 4], strides = [1, 1]} : vector<9x4xf32> to vector<1x4xf32>
    %65 = vector.shape_cast %64 : vector<1x4xf32> to vector<4xf32>
    %66 = vector.shape_cast %65 : vector<4xf32> to vector<1x1x4xf32>
    %67 = vector.broadcast %66 : vector<1x1x4xf32> to vector<16x16x4xf32>
    %68 = arith.mulf %22, %67 : vector<16x16x4xf32>
    %69 = arith.addf %63, %68 : vector<16x16x4xf32>
    %70 = vector.extract_strided_slice %0 {offsets = [0, 0], sizes = [1, 4], strides = [1, 1]} : vector<9x4xf32> to vector<1x4xf32>
    %71 = vector.shape_cast %70 : vector<1x4xf32> to vector<4xf32>
    %72 = vector.shape_cast %71 : vector<4xf32> to vector<1x4xf32>
    %73 = vector.broadcast %72 : vector<1x4xf32> to vector<16x4xf32>
    %74 = arith.mulf %24, %73 : vector<16x4xf32>
    %75 = vector.extract_strided_slice %0 {offsets = [1, 0], sizes = [1, 4], strides = [1, 1]} : vector<9x4xf32> to vector<1x4xf32>
    %76 = vector.shape_cast %75 : vector<1x4xf32> to vector<4xf32>
    %77 = vector.shape_cast %76 : vector<4xf32> to vector<1x4xf32>
    %78 = vector.broadcast %77 : vector<1x4xf32> to vector<16x4xf32>
    %79 = arith.mulf %8, %78 : vector<16x4xf32>
    %80 = arith.addf %74, %79 : vector<16x4xf32>
    %81 = vector.extract_strided_slice %0 {offsets = [2, 0], sizes = [1, 4], strides = [1, 1]} : vector<9x4xf32> to vector<1x4xf32>
    %82 = vector.shape_cast %81 : vector<1x4xf32> to vector<4xf32>
    %83 = vector.shape_cast %82 : vector<4xf32> to vector<1x4xf32>
    %84 = vector.broadcast %83 : vector<1x4xf32> to vector<16x4xf32>
    %85 = arith.mulf %26, %84 : vector<16x4xf32>
    %86 = arith.addf %80, %85 : vector<16x4xf32>
    %87 = vector.shape_cast %86 : vector<16x4xf32> to vector<1x16x4xf32>
    %88 = vector.extract_strided_slice %69 {offsets = [0, 0, 0], sizes = [15, 16, 4], strides = [1, 1, 1]} : vector<16x16x4xf32> to vector<15x16x4xf32>
    %89 = tpu.concatenate %87, %88 in 0 : vector<1x16x4xf32>, vector<15x16x4xf32> -> vector<16x16x4xf32>
    %90 = vector.extract_strided_slice %0 {offsets = [6, 0], sizes = [1, 4], strides = [1, 1]} : vector<9x4xf32> to vector<1x4xf32>
    %91 = vector.shape_cast %90 : vector<1x4xf32> to vector<4xf32>
    %92 = vector.shape_cast %91 : vector<4xf32> to vector<1x1x4xf32>
    %93 = vector.broadcast %92 : vector<1x1x4xf32> to vector<16x16x4xf32>
    %94 = arith.mulf %20, %93 : vector<16x16x4xf32>
    %95 = vector.extract_strided_slice %0 {offsets = [7, 0], sizes = [1, 4], strides = [1, 1]} : vector<9x4xf32> to vector<1x4xf32>
    %96 = vector.shape_cast %95 : vector<1x4xf32> to vector<4xf32>
    %97 = vector.shape_cast %96 : vector<4xf32> to vector<1x1x4xf32>
    %98 = vector.broadcast %97 : vector<1x1x4xf32> to vector<16x16x4xf32>
    %99 = arith.mulf %17, %98 : vector<16x16x4xf32>
    %100 = arith.addf %94, %99 : vector<16x16x4xf32>
    %101 = vector.extract_strided_slice %0 {offsets = [8, 0], sizes = [1, 4], strides = [1, 1]} : vector<9x4xf32> to vector<1x4xf32>
    %102 = vector.shape_cast %101 : vector<1x4xf32> to vector<4xf32>
    %103 = vector.shape_cast %102 : vector<4xf32> to vector<1x1x4xf32>
    %104 = vector.broadcast %103 : vector<1x1x4xf32> to vector<16x16x4xf32>
    %105 = arith.mulf %22, %104 : vector<16x16x4xf32>
    %106 = arith.addf %100, %105 : vector<16x16x4xf32>
    %107 = vector.extract_strided_slice %0 {offsets = [6, 0], sizes = [1, 4], strides = [1, 1]} : vector<9x4xf32> to vector<1x4xf32>
    %108 = vector.shape_cast %107 : vector<1x4xf32> to vector<4xf32>
    %109 = vector.shape_cast %108 : vector<4xf32> to vector<1x4xf32>
    %110 = vector.broadcast %109 : vector<1x4xf32> to vector<16x4xf32>
    %111 = arith.mulf %28, %110 : vector<16x4xf32>
    %112 = vector.extract_strided_slice %0 {offsets = [7, 0], sizes = [1, 4], strides = [1, 1]} : vector<9x4xf32> to vector<1x4xf32>
    %113 = vector.shape_cast %112 : vector<1x4xf32> to vector<4xf32>
    %114 = vector.shape_cast %113 : vector<4xf32> to vector<1x4xf32>
    %115 = vector.broadcast %114 : vector<1x4xf32> to vector<16x4xf32>
    %116 = arith.mulf %14, %115 : vector<16x4xf32>
    %117 = arith.addf %111, %116 : vector<16x4xf32>
    %118 = vector.extract_strided_slice %0 {offsets = [8, 0], sizes = [1, 4], strides = [1, 1]} : vector<9x4xf32> to vector<1x4xf32>
    %119 = vector.shape_cast %118 : vector<1x4xf32> to vector<4xf32>
    %120 = vector.shape_cast %119 : vector<4xf32> to vector<1x4xf32>
    %121 = vector.broadcast %120 : vector<1x4xf32> to vector<16x4xf32>
    %122 = arith.mulf %30, %121 : vector<16x4xf32>
    %123 = arith.addf %117, %122 : vector<16x4xf32>
    %124 = vector.extract_strided_slice %106 {offsets = [1, 0, 0], sizes = [15, 16, 4], strides = [1, 1, 1]} : vector<16x16x4xf32> to vector<15x16x4xf32>
    %125 = vector.shape_cast %123 : vector<16x4xf32> to vector<1x16x4xf32>
    %126 = tpu.concatenate %124, %125 in 0 : vector<15x16x4xf32>, vector<1x16x4xf32> -> vector<16x16x4xf32>
    %127 = arith.addf %52, %89 : vector<16x16x4xf32>
    %128 = arith.addf %127, %126 : vector<16x16x4xf32>
    %c0_20 = arith.constant 0 : index
    %c0_21 = arith.constant 0 : index
    %c0_22 = arith.constant 0 : index
    %c0_23 = arith.constant 0 : index
    %129 = vector.load %arg8[%c0_20, %c0_21, %c0_22, %c0_23] : memref<1x16x16x4xf32, #tpu.memory_space<vmem>>, vector<1x16x16x4xf32>
    %130 = vector.shape_cast %129 : vector<1x16x16x4xf32> to vector<16x16x4xf32>
    %131 = vector.shape_cast %128 : vector<16x16x4xf32> to vector<1x16x16x4xf32>
    tpu.vector_store %arg8[%c0_20, %c0_21, %c0_22, %c0_23], %131 {strides = array<i32>} : memref<1x16x16x4xf32, #tpu.memory_space<vmem>>, vector<1x16x16x4xf32>,
    return
  }
  func.func @transform_0(%arg0: i32, %arg1: i32, %arg2: i32) -> (i32, i32, i32, i32) {
    %c0_i32 = arith.constant 0 : i32
    %c0_i32_0 = arith.constant 0 : i32
    return %arg0, %arg2, %c0_i32, %arg1 : i32, i32, i32, i32
  }
  func.func @transform_1(%arg0: i32, %arg1: i32, %arg2: i32) -> (i32, i32, i32, i32) {
    %c16_i32 = arith.constant 16 : i32
    %0 = arith.muli %arg2, %c16_i32 : i32
    %c1_i32 = arith.constant 1 : i32
    %1 = arith.subi %0, %c1_i32 : i32
    %c0_i32 = arith.constant 0 : i32
    %2 = arith.maxsi %1, %c0_i32 : i32
    %c0_i32_0 = arith.constant 0 : i32
    %c0_i32_1 = arith.constant 0 : i32
    return %arg0, %2, %c0_i32_0, %arg1 : i32, i32, i32, i32
  }
  func.func @transform_2(%arg0: i32, %arg1: i32, %arg2: i32) -> (i32, i32, i32, i32) {
    %c1_i32 = arith.constant 1 : i32
    %0 = arith.addi %arg2, %c1_i32 : i32
    %c16_i32 = arith.constant 16 : i32
    %1 = arith.muli %0, %c16_i32 : i32
    %c15_i32 = arith.constant 15 : i32
    %2 = arith.minsi %1, %c15_i32 : i32
    %c0_i32 = arith.constant 0 : i32
    %c0_i32_0 = arith.constant 0 : i32
    return %arg0, %2, %c0_i32, %arg1 : i32, i32, i32, i32
  }
  func.func @transform_3(%arg0: i32, %arg1: i32, %arg2: i32) -> (i32, i32) {
    %c0_i32 = arith.constant 0 : i32
    %c0_i32_0 = arith.constant 0 : i32
    return %c0_i32, %arg1 : i32, i32
  }
  func.func @transform_4(%arg0: i32, %arg1: i32, %arg2: i32) -> (i32, i32) {
    %c0_i32 = arith.constant 0 : i32
    %c0_i32_0 = arith.constant 0 : i32
    return %c0_i32, %arg1 : i32, i32
  }
  func.func @transform_5(%arg0: i32, %arg1: i32, %arg2: i32) -> (i32, i32, i32, i32) {
    %c0_i32 = arith.constant 0 : i32
    %c0_i32_0 = arith.constant 0 : i32
    return %arg0, %arg2, %c0_i32, %arg1 : i32, i32, i32, i32
  }
}

</mosaic_0001>

<bundles_post_ra>
// kernel: tpu_custom_call.1
= control target key start
LH: loop header
LB: loop body
LE: loop exit
PB: predicated region body
PF: predicated region fallthrough
CT: control target
= control target key end

     0   :  { %s1722_s18 = smov 0   ;;  %s1724_s19 = smov 0   ;;  %s2801_s0 = inlined_call_operand.vmem [shape: f32[2,16,16,4], index: 0, kind: input, shape index: {}]   ;;  %s2802_s1 = inlined_call_operand.vmem [shape: f32[2,16,16,4], index: 1, kind: input, shape index: {}]   ;;  %s2803_s2 = inlined_call_operand.vmem [shape: f32[2,16,16,4], index: 2, kind: input, shape index: {}]   ;;  %s2804_s3 = inlined_call_operand.vmem [shape: f32[9,4], index: 3, kind: input, shape index: {}]   ;;  %s2805_s4 = inlined_call_operand.vmem [shape: f32[1,4], index: 4, kind: input, shape index: {}]   ;;  %s2806_s5 = inlined_call_operand.vmem [shape: f32[2,16,16,4], index: 5, kind: output, shape index: {}]  }
   0x1   :  { %s1726_s20 = smov 0  }
   0x2 LB: > { %s34_s1 = sadd.s32 1, %s1685_s19  ;;  %p1622_p0 = scmp.ge.s32.totalorder %s1689_s20, 1  ;;  %s1689_s20 = sphi %s1726_s20, %s15_s20   ;;  %s1685_s19 = sphi %s1724_s19, %s2808_s19   ;;  %s1681_s18 = sphi %s1722_s18, %s2807_s18  }
   0x3   : > { %p36_p1 = scmp.ge.s32.totalorder %s34_s1, 2  ;;  %p314_p2 = scmp.lt.s32.totalorder %s1689_s20, 3 }
   0x5   : > { %s2810_s1 = smov (%p36_p1, %s34_s1), 0  ;;  %p315_p3 = pnand %p1622_p0, %p314_p2 }
   0x6   : > { %p398_p4 = scmp.lt.s32.totalorder (!%p315_p3), %s1681_s18, 1 }
   0x7   : > { %318 = sbr.rel (%p315_p3) target bundleno = 202 (0xca), region = 40 }
   0xc   : > { %v472_v0 = vld [vmem:[%s2804_s3] sm:$0xff]  ;;  %v778_v1 = vlaneseq  ;;  %s2812_s18 = smov (!%p398_p4, %s1681_s18), 1  ;;  %v1691_v2 = vmov 0.0   ;;  %vm555_vm0 = vcmask 1040384   ;;  %vm652_vm1 = vcmask 1046528  }
   0xd   : > { %v1745_v3 = vrot.slane %v1691_v2, 7  ;;  %v777_v4 = vadd.f32 1.0, %v472_v0  ;;  %v1747_v6 = vrot.slane %v1691_v2, 1  ;;  %s1635_s22 = sshll.u32 %s2812_s18, 8  ;;  %v1792_v31 = vld [vmem:[%s2804_s3 + $0x8] ss:$0 sm:$0xff] }
   0xe   : > { %v779_v5 = vshrl.u32 %v778_v1, 7  ;;  %s1759_s25 = scalar_lea.vmem %s2801_s0, %s1635_s22  ;;  %vm1396_vm2 = vcmask 31744   ;;  %v1823_v48 = vld [vmem:[%s2805_s4] ss:$0 sm:$0xff]  ;;  %s1871_s7 = scalar_lea.vmem %s2806_s5, %s1635_s22 }
   0xf   : > { %v1752_v7 = vsel %vm555_vm0, 0.0, %v1745_v3  ;;  %v1762_v15 = vld [vmem:[%s1759_s25] sm:$0xff]  ;;  %v1765_v16 = vld [vmem:[%s1759_s25 + $0x8] sm:$0xff]  ;;  %v1768_v17 = vld [vmem:[%s1759_s25 + $0x10] sm:$0xff]  ;;  %v1842_v60 = vsel %vm652_vm1, %v1747_v6, 0.0 }
  0x10   : > { %v780_v8 = vsub.s32 4, %v779_v5  ;;  %v816_v9 = vsub.s32 3, %v779_v5  ;;  %v884_v10 = vsub.s32 5, %v779_v5  ;;  %v990_v11 = vsub.s32 0, %v779_v5  ;;  %v1777_v22 = vld [vmem:[%s1759_s25 + $0x18] sm:$0xff]  ;;  %v1851_v1 = vld [vmem:[%s1759_s25 + $0x20] sm:$0xff] }
  0x11   : > { %v1024_v12 = vsub.s32 1, %v779_v5  ;;  %v1088_v13 = vsub.s32 2, %v779_v5  ;;  %v1162_v14 = vsub.s32 6, %v779_v5  ;;  %v1196_v21 = vsub.s32 7, %v779_v5 }
  0x12   : > { %v1770_v18 = vrot.slane %v777_v4, %v780_v8  ;;  %v1772_v19 = vrot.slane %v472_v0, %v816_v9  ;;  %v1774_v20 = vrot.slane %v472_v0, %v884_v10  ;;  %v556_v23 = vrot.slane %v1762_v15, 7 }
  0x13   : > { %v559_v24 = vrot.slane %v1768_v17, 7  ;;  %v653_v25 = vrot.slane %v1762_v15, 1  ;;  %v654_v26 = vrot.slane %v1765_v16, 1  ;;  %v656_v27 = vrot.slane %v1768_v17, 1 }
  0x14   : > { %v657_v28 = vrot.slane %v1777_v22, 1  ;;  %v782_v29 = vmul.f32 %v1770_v18, %v1762_v15  ;;  %v1787_v30 = vrot.slane %v472_v0, %v990_v11  ;;  %v636_v32 = vsel %vm555_vm0, 0.0, %v556_v23 }
  0x15   : > { %v1796_v33 = vsel %vm555_vm0, 0.0, %v559_v24  ;;  %v655_v34 = vsel %vm652_vm1, %v653_v25, %v654_v26  ;;  %v1799_v35 = vrot.slane %v472_v0, %v1024_v12  ;;  %v818_v37 = vmul.f32 %v1772_v19, %v636_v32 }
  0x16   : > { %v1802_v36 = vsel %vm652_vm1, %v656_v27, %v657_v28  ;;  %v886_v38 = vmul.f32 %v1774_v20, %v655_v34  ;;  %v1806_v39 = vrot.slane %v472_v0, %v1088_v13  ;;  %v1150_v40 = vmul.f32 %v1787_v30, %v1752_v7  ;;  %v1864_v13 = vld [vmem:[%s1759_s25 + $0x28] sm:$0xff] }
  0x17   : > { %v1152_v41 = vmul.f32 0.0, %v1799_v35  ;;  %v1811_v42 = vrot.slane %v472_v0, %v1162_v14  ;;  %v1813_v43 = vrot.slane %v472_v0, %v1196_v21  ;;  %v850_v44 = vadd.f32 %v818_v37, %v782_v29 }
  0x18   : > { %v1156_v45 = vmul.f32 %v1806_v39, %v1747_v6  ;;  %v1262_v46 = vmul.f32 %v1792_v31, %v1802_v36  ;;  %v557_v47 = vrot.slane %v1765_v16, 7  ;;  %v560_v52 = vrot.slane %v1777_v22, 7 }
  0x19   : > { %v1154_v49 = vadd.f32 %v1152_v41, %v1150_v40  ;;  %v1164_v50 = vmul.f32 %v1811_v42, %v1796_v33  ;;  %v1198_v51 = vmul.f32 %v1813_v43, %v1768_v17  ;;  %v918_v53 = vadd.f32 %v886_v38, %v850_v44 }
  0x1a   : > { %v558_v54 = vsel %vm555_vm0, %v556_v23, %v557_v47  ;;  %v1832_v55 = vsel %vm652_vm1, %v654_v26, 0.0  ;;  %v1835_v56 = vsel %vm652_vm1, %v657_v28, 0.0  ;;  %v1838_v59 = vsel %vm555_vm0, %v559_v24, %v560_v52 }
  0x1b   : > { %v1158_v57 = vadd.f32 %v1156_v45, %v1154_v49  ;;  %v1228_v58 = vadd.f32 %v1198_v51, %v1164_v50  ;;  %v956_v61 = vadd.f32 %v1823_v48, %v918_v53  ;;  %v783_v62 = vmul.f32 %v1770_v18, %v1765_v16 }
  0x1c   : > { %v819_v63 = vmul.f32 %v1772_v19, %v558_v54  ;;  %v887_v0 = vmul.f32 %v1774_v20, %v1832_v55  ;;  %v1151_v4 = vmul.f32 %v1787_v30, %v1745_v3  ;;  %v1157_v5 = vmul.f32 %v1806_v39, %v1842_v60 }
  0x1d   : > { %v1292_v2 = vadd.f32 %v1262_v46, %v1228_v58  ;;  %v1165_v8 = vmul.f32 %v1811_v42, %v1838_v59  ;;  %v1332_v9 = vadd.f32 %v1158_v57, %v956_v61  ;;  %v1199_v11 = vmul.f32 %v1813_v43, %v1777_v22 }
  0x1e   : > { %v851_v10 = vadd.f32 %v819_v63, %v783_v62  ;;  %v1263_v12 = vmul.f32 %v1792_v31, %v1835_v56  ;;  %v1155_v14 = vadd.f32 %v1152_v41, %v1151_v4  ;;  %v562_v21 = vrot.slane %v1851_v1, 7 }
  0x1f   : > { %v659_v23 = vrot.slane %v1851_v1, 1  ;;  %v660_v24 = vrot.slane %v1864_v13, 1  ;;  %v1364_v25 = vadd.f32 %v1332_v9, %v1292_v2  ;;  %v1229_v27 = vadd.f32 %v1199_v11, %v1165_v8 }
  0x20   : > { %v919_v26 = vadd.f32 %v887_v0, %v851_v10  ;;  %v784_v28 = vmul.f32 %v1770_v18, %v1768_v17  ;;  %v1159_v29 = vadd.f32 %v1157_v5, %v1155_v14  ;;  %v1879_v37 = vsel %vm555_vm0, 0.0, %v562_v21  ;;  %v1917_v10 = vld [vmem:[%s1759_s25 + $0x30] sm:$0xff] }
  0x21   : > { %v1882_v38 = vsel %vm652_vm1, %v659_v23, %v660_v24  ;;  %v820_v40 = vmul.f32 %v1772_v19, %v1796_v33  ;;  %1397 = vst.msk [vmem:[%s1871_s7] sm:$0xff] %vm1396_vm2, %v1364_v25  ;;  %v1293_v44 = vadd.f32 %v1263_v12, %v1229_v27  ;;  %v888_v45 = vmul.f32 %v1774_v20, %v1802_v36 }
  0x22   : > { %v957_v41 = vadd.f32 %v1823_v48, %v919_v26  ;;  %v992_v46 = vmul.f32 %v1787_v30, %v636_v32  ;;  %v1026_v49 = vmul.f32 %v1799_v35, %v1762_v15  ;;  %v1090_v50 = vmul.f32 %v1806_v39, %v655_v34 }
  0x23   : > { %v852_v47 = vadd.f32 %v820_v40, %v784_v28  ;;  %v1166_v51 = vmul.f32 %v1811_v42, %v1879_v37  ;;  %v1200_v53 = vmul.f32 %v1813_v43, %v1851_v1  ;;  %v1264_v57 = vmul.f32 %v1792_v31, %v1882_v38  ;;  %v1932_v28 = vld [vmem:[%s1759_s25 + $0x38] sm:$0xff] }
  0x24   : > { %v1333_v52 = vadd.f32 %v1159_v29, %v957_v41  ;;  %v563_v32 = vrot.slane %v1864_v13, 7  ;;  %v1056_v61 = vadd.f32 %v1026_v49, %v992_v46  ;;  %v1903_v15 = vsel %vm652_vm1, %v660_v24, 0.0 }
  0x25   : > { %v920_v58 = vadd.f32 %v888_v45, %v852_v47  ;;  %v785_v34 = vmul.f32 %v1770_v18, %v1777_v22  ;;  %v1230_v63 = vadd.f32 %v1200_v53, %v1166_v51  ;;  %v821_v2 = vmul.f32 %v1772_v19, %v1838_v59 }
  0x26   : > { %v1365_v62 = vadd.f32 %v1333_v52, %v1293_v44  ;;  %v1908_v0 = vsel %vm555_vm0, %v562_v21, %v563_v32  ;;  %v1120_v5 = vadd.f32 %v1090_v50, %v1056_v61  ;;  %v889_v8 = vmul.f32 %v1774_v20, %v1835_v56 }
  0x27   : > { %v958_v4 = vadd.f32 %v1823_v48, %v920_v58  ;;  %v993_v9 = vmul.f32 %v1787_v30, %v558_v54  ;;  %v1294_v11 = vadd.f32 %v1264_v57, %v1230_v63  ;;  %v853_v12 = vadd.f32 %v821_v2, %v785_v34 }
  0x28   : > { %1398 = vst.msk [vmem:[%s1871_s7 + $0x8] sm:$0xff] %vm1396_vm2, %v1365_v62  ;;  %v1027_v14 = vmul.f32 %v1799_v35, %v1765_v16  ;;  %v1091_v21 = vmul.f32 %v1806_v39, %v1832_v55  ;;  %v1167_v24 = vmul.f32 %v1811_v42, %v1908_v0  ;;  %v1201_v54 = vmul.f32 %v1813_v43, %v1864_v13 }
  0x29   : > { %v1334_v23 = vadd.f32 %v1120_v5, %v958_v4  ;;  %v1265_v25 = vmul.f32 %v1792_v31, %v1903_v15  ;;  %v921_v26 = vadd.f32 %v889_v8, %v853_v12  ;;  %v565_v16 = vrot.slane %v1917_v10, 7 }
  0x2a   : > { %v1057_v27 = vadd.f32 %v1027_v14, %v993_v9  ;;  %v662_v29 = vrot.slane %v1917_v10, 1  ;;  %v1231_v40 = vadd.f32 %v1201_v54, %v1167_v24  ;;  %v663_v41 = vrot.slane %v1932_v28, 1  ;;  %v1983_v24 = vld [vmem:[%s1759_s25 + $0x40] sm:$0xff] }
  0x2b   : > { %v1366_v55 = vadd.f32 %v1334_v23, %v1294_v11  ;;  %v786_v44 = vmul.f32 %v1770_v18, %v1851_v1  ;;  %v959_v45 = vadd.f32 %v1823_v48, %v921_v26  ;;  %v1941_v47 = vsel %vm555_vm0, 0.0, %v565_v16 }
  0x2c   : > { %v1121_v46 = vadd.f32 %v1091_v21, %v1057_v27  ;;  %v822_v49 = vmul.f32 %v1772_v19, %v1879_v37  ;;  %v1295_v50 = vadd.f32 %v1265_v25, %v1231_v40  ;;  %v1948_v51 = vsel %vm652_vm1, %v662_v29, %v663_v41 }
  0x2d   : > { %1399 = vst.msk [vmem:[%s1871_s7 + $0x10] sm:$0xff] %vm1396_vm2, %v1366_v55  ;;  %v890_v52 = vmul.f32 %v1774_v20, %v1882_v38  ;;  %v994_v53 = vmul.f32 %v1787_v30, %v1796_v33  ;;  %v1028_v58 = vmul.f32 %v1799_v35, %v1768_v17  ;;  %v1092_v61 = vmul.f32 %v1806_v39, %v1802_v36 }
  0x2e   : > { %v1335_v57 = vadd.f32 %v1121_v46, %v959_v45  ;;  %v854_v32 = vadd.f32 %v822_v49, %v786_v44  ;;  %v1168_v34 = vmul.f32 %v1811_v42, %v1941_v47  ;;  %v1202_v62 = vmul.f32 %v1813_v43, %v1917_v10  ;;  %v1996_v44 = vld [vmem:[%s1759_s25 + $0x48] sm:$0xff] }
  0x2f   : > { %v1266_v63 = vmul.f32 %v1792_v31, %v1948_v51  ;;  %v566_v33 = vrot.slane %v1932_v28, 7  ;;  %v1058_v5 = vadd.f32 %v1028_v58, %v994_v53  ;;  %v1966_v17 = vsel %vm652_vm1, %v663_v41, 0.0 }
  0x30   : > { %v1367_v2 = vadd.f32 %v1335_v57, %v1295_v50  ;;  %v922_v4 = vadd.f32 %v890_v52, %v854_v32  ;;  %v1232_v8 = vadd.f32 %v1202_v62, %v1168_v34  ;;  %v787_v9 = vmul.f32 %v1770_v18, %v1864_v13 }
  0x31   : > { %v1969_v36 = vsel %vm555_vm0, %v565_v16, %v566_v33  ;;  %v823_v11 = vmul.f32 %v1772_v19, %v1908_v0  ;;  %v1122_v14 = vadd.f32 %v1092_v61, %v1058_v5  ;;  %v891_v21 = vmul.f32 %v1774_v20, %v1903_v15 }
  0x32   : > { %1400 = vst.msk [vmem:[%s1871_s7 + $0x18] sm:$0xff] %vm1396_vm2, %v1367_v2  ;;  %v960_v12 = vadd.f32 %v1823_v48, %v922_v4  ;;  %v995_v23 = vmul.f32 %v1787_v30, %v1838_v59  ;;  %v1296_v54 = vadd.f32 %v1266_v63, %v1232_v8  ;;  %v1029_v26 = vmul.f32 %v1799_v35, %v1777_v22 }
  0x33   : > { %v855_v25 = vadd.f32 %v823_v11, %v787_v9  ;;  %v1093_v27 = vmul.f32 %v1806_v39, %v1835_v56  ;;  %v1169_v29 = vmul.f32 %v1811_v42, %v1969_v36  ;;  %v1203_v55 = vmul.f32 %v1813_v43, %v1932_v28 }
  0x34   : > { %v1336_v16 = vadd.f32 %v1122_v14, %v960_v12  ;;  %v1267_v59 = vmul.f32 %v1792_v31, %v1966_v17  ;;  %v1059_v41 = vadd.f32 %v1029_v26, %v995_v23  ;;  %v568_v22 = vrot.slane %v1983_v24, 7 }
  0x35   : > { %v923_v40 = vadd.f32 %v891_v21, %v855_v25  ;;  %v665_v45 = vrot.slane %v1983_v24, 1  ;;  %v1233_v46 = vadd.f32 %v1203_v55, %v1169_v29  ;;  %v666_v49 = vrot.slane %v1996_v44, 1  ;;  %v2047_v29 = vld [vmem:[%s1759_s25 + $0x50] sm:$0xff] }
  0x36   : > { %v1368_v56 = vadd.f32 %v1336_v16, %v1296_v54  ;;  %v788_v50 = vmul.f32 %v1770_v18, %v1917_v10  ;;  %v1123_v53 = vadd.f32 %v1093_v27, %v1059_v41  ;;  %v2005_v57 = vsel %vm555_vm0, 0.0, %v568_v22 }
  0x37   : > { %v961_v52 = vadd.f32 %v1823_v48, %v923_v40  ;;  %v824_v32 = vmul.f32 %v1772_v19, %v1941_v47  ;;  %v1297_v58 = vadd.f32 %v1267_v59, %v1233_v46  ;;  %v2012_v61 = vsel %vm652_vm1, %v665_v45, %v666_v49 }
  0x38   : > { %1401 = vst.msk [vmem:[%s1871_s7 + $0x20] sm:$0xff] %vm1396_vm2, %v1368_v56  ;;  %v892_v34 = vmul.f32 %v1774_v20, %v1948_v51  ;;  %v996_v62 = vmul.f32 %v1787_v30, %v1879_v37  ;;  %v1030_v2 = vmul.f32 %v1799_v35, %v1851_v1  ;;  %v1094_v4 = vmul.f32 %v1806_v39, %v1882_v38 }
  0x39   : > { %v1337_v63 = vadd.f32 %v1123_v53, %v961_v52  ;;  %v856_v33 = vadd.f32 %v824_v32, %v788_v50  ;;  %v1170_v5 = vmul.f32 %v1811_v42, %v2005_v57  ;;  %v1204_v8 = vmul.f32 %v1813_v43, %v1983_v24  ;;  %v2060_v50 = vld [vmem:[%s1759_s25 + $0x58] sm:$0xff] }
  0x3a   : > { %v1268_v9 = vmul.f32 %v1792_v31, %v2012_v61  ;;  %v569_v37 = vrot.slane %v1996_v44, 7  ;;  %v1060_v14 = vadd.f32 %v1030_v2, %v996_v62  ;;  %v2030_v1 = vsel %vm652_vm1, %v666_v49, 0.0 }
  0x3b   : > { %v1369_v11 = vadd.f32 %v1337_v63, %v1297_v58  ;;  %v924_v12 = vadd.f32 %v892_v34, %v856_v33  ;;  %v1234_v21 = vadd.f32 %v1204_v8, %v1170_v5  ;;  %v789_v23 = vmul.f32 %v1770_v18, %v1932_v28 }
  0x3c   : > { %v2033_v38 = vsel %vm555_vm0, %v568_v22, %v569_v37  ;;  %v825_v54 = vmul.f32 %v1772_v19, %v1969_v36  ;;  %v1124_v26 = vadd.f32 %v1094_v4, %v1060_v14  ;;  %v893_v27 = vmul.f32 %v1774_v20, %v1966_v17 }
  0x3d   : > { %1402 = vst.msk [vmem:[%s1871_s7 + $0x28] sm:$0xff] %vm1396_vm2, %v1369_v11  ;;  %v962_v25 = vadd.f32 %v1823_v48, %v924_v12  ;;  %v997_v16 = vmul.f32 %v1787_v30, %v1908_v0  ;;  %v1298_v55 = vadd.f32 %v1268_v9, %v1234_v21  ;;  %v1031_v40 = vmul.f32 %v1799_v35, %v1864_v13 }
  0x3e   : > { %v857_v59 = vadd.f32 %v825_v54, %v789_v23  ;;  %v1095_v41 = vmul.f32 %v1806_v39, %v1903_v15  ;;  %v1171_v45 = vmul.f32 %v1811_v42, %v2033_v38  ;;  %v1205_v56 = vmul.f32 %v1813_v43, %v1996_v44 }
  0x3f   : > { %v1338_v22 = vadd.f32 %v1124_v26, %v962_v25  ;;  %v1269_v0 = vmul.f32 %v1792_v31, %v2030_v1  ;;  %v1061_v49 = vadd.f32 %v1031_v40, %v997_v16  ;;  %v571_v13 = vrot.slane %v2047_v29, 7 }
  0x40   : > { %v925_v46 = vadd.f32 %v893_v27, %v857_v59  ;;  %v668_v52 = vrot.slane %v2047_v29, 1  ;;  %v1235_v53 = vadd.f32 %v1205_v56, %v1171_v45  ;;  %v669_v32 = vrot.slane %v2060_v50, 1  ;;  %v2111_v45 = vld [vmem:[%s1759_s25 + $0x60] sm:$0xff] }
  0x41   : > { %v1370_v15 = vadd.f32 %v1338_v22, %v1298_v55  ;;  %v790_v58 = vmul.f32 %v1770_v18, %v1983_v24  ;;  %v1125_v62 = vadd.f32 %v1095_v41, %v1061_v49  ;;  %v2069_v63 = vsel %vm555_vm0, 0.0, %v571_v13 }
  0x42   : > { %v963_v34 = vadd.f32 %v1823_v48, %v925_v46  ;;  %v826_v33 = vmul.f32 %v1772_v19, %v2005_v57  ;;  %v1299_v2 = vadd.f32 %v1269_v0, %v1235_v53  ;;  %v2076_v4 = vsel %vm652_vm1, %v668_v52, %v669_v32 }
  0x43   : > { %1403 = vst.msk [vmem:[%s1871_s7 + $0x30] sm:$0xff] %vm1396_vm2, %v1370_v15  ;;  %v894_v5 = vmul.f32 %v1774_v20, %v2012_v61  ;;  %v998_v8 = vmul.f32 %v1787_v30, %v1941_v47  ;;  %v1032_v11 = vmul.f32 %v1799_v35, %v1917_v10  ;;  %v1096_v12 = vmul.f32 %v1806_v39, %v1948_v51 }
  0x44   : > { %v1339_v9 = vadd.f32 %v1125_v62, %v963_v34  ;;  %v858_v37 = vadd.f32 %v826_v33, %v790_v58  ;;  %v1172_v14 = vmul.f32 %v1811_v42, %v2069_v63  ;;  %v1206_v21 = vmul.f32 %v1813_v43, %v2047_v29  ;;  %v2124_v58 = vld [vmem:[%s1759_s25 + $0x68] sm:$0xff] }
  0x45   : > { %v1270_v23 = vmul.f32 %v1792_v31, %v2076_v4  ;;  %v572_v47 = vrot.slane %v2060_v50, 7  ;;  %v1062_v26 = vadd.f32 %v1032_v11, %v998_v8  ;;  %v2094_v10 = vsel %vm652_vm1, %v669_v32, 0.0 }
  0x46   : > { %v1371_v54 = vadd.f32 %v1339_v9, %v1299_v2  ;;  %v926_v25 = vadd.f32 %v894_v5, %v858_v37  ;;  %v1236_v27 = vadd.f32 %v1206_v21, %v1172_v14  ;;  %v791_v16 = vmul.f32 %v1770_v18, %v1996_v44 }
  0x47   : > { %v2097_v51 = vsel %vm555_vm0, %v571_v13, %v572_v47  ;;  %v827_v55 = vmul.f32 %v1772_v19, %v2033_v38  ;;  %v1126_v40 = vadd.f32 %v1096_v12, %v1062_v26  ;;  %v895_v41 = vmul.f32 %v1774_v20, %v2030_v1 }
  0x48   : > { %1404 = vst.msk [vmem:[%s1871_s7 + $0x38] sm:$0xff] %vm1396_vm2, %v1371_v54  ;;  %v964_v59 = vadd.f32 %v1823_v48, %v926_v25  ;;  %v999_v22 = vmul.f32 %v1787_v30, %v1969_v36  ;;  %v1300_v56 = vadd.f32 %v1270_v23, %v1236_v27  ;;  %v1033_v46 = vmul.f32 %v1799_v35, %v1932_v28 }
  0x49   : > { %v859_v0 = vadd.f32 %v827_v55, %v791_v16  ;;  %v1097_v49 = vmul.f32 %v1806_v39, %v1966_v17  ;;  %v1173_v52 = vmul.f32 %v1811_v42, %v2097_v51  ;;  %v1207_v15 = vmul.f32 %v1813_v43, %v2060_v50 }
  0x4a   : > { %v1340_v13 = vadd.f32 %v1126_v40, %v964_v59  ;;  %v1271_v36 = vmul.f32 %v1792_v31, %v2094_v10  ;;  %v1063_v32 = vadd.f32 %v1033_v46, %v999_v22  ;;  %v574_v28 = vrot.slane %v2111_v45, 7 }
  0x4b   : > { %v927_v53 = vadd.f32 %v895_v41, %v859_v0  ;;  %v671_v34 = vrot.slane %v2111_v45, 1  ;;  %v1237_v62 = vadd.f32 %v1207_v15, %v1173_v52  ;;  %v672_v33 = vrot.slane %v2124_v58, 1  ;;  %v2175_v52 = vld [vmem:[%s1759_s25 + $0x70] sm:$0xff] }
  0x4c   : > { %v1372_v17 = vadd.f32 %v1340_v13, %v1300_v56  ;;  %v792_v2 = vmul.f32 %v1770_v18, %v2047_v29  ;;  %v1127_v8 = vadd.f32 %v1097_v49, %v1063_v32  ;;  %v2133_v9 = vsel %vm555_vm0, 0.0, %v574_v28 }
  0x4d   : > { %v965_v5 = vadd.f32 %v1823_v48, %v927_v53  ;;  %v828_v37 = vmul.f32 %v1772_v19, %v2069_v63  ;;  %v1301_v11 = vadd.f32 %v1271_v36, %v1237_v62  ;;  %v2140_v12 = vsel %vm652_vm1, %v671_v34, %v672_v33 }
  0x4e   : > { %1405 = vst.msk [vmem:[%s1871_s7 + $0x40] sm:$0xff] %vm1396_vm2, %v1372_v17  ;;  %v896_v14 = vmul.f32 %v1774_v20, %v2076_v4  ;;  %v1000_v21 = vmul.f32 %v1787_v30, %v2005_v57  ;;  %v1034_v54 = vmul.f32 %v1799_v35, %v1983_v24  ;;  %v1098_v25 = vmul.f32 %v1806_v39, %v2012_v61 }
  0x4f   : > { %v1341_v23 = vadd.f32 %v1127_v8, %v965_v5  ;;  %v860_v47 = vadd.f32 %v828_v37, %v792_v2  ;;  %v1174_v26 = vmul.f32 %v1811_v42, %v2133_v9  ;;  %v1208_v27 = vmul.f32 %v1813_v43, %v2111_v45  ;;  %v2188_v2 = vld [vmem:[%s1759_s25 + $0x78] sm:$0xff] }
  0x50   : > { %v1272_v16 = vmul.f32 %v1792_v31, %v2140_v12  ;;  %v575_v57 = vrot.slane %v2124_v58, 7  ;;  %v1064_v40 = vadd.f32 %v1034_v54, %v1000_v21  ;;  %v2158_v24 = vsel %vm652_vm1, %v672_v33, 0.0 }
  0x51   : > { %v1373_v55 = vadd.f32 %v1341_v23, %v1301_v11  ;;  %v928_v59 = vadd.f32 %v896_v14, %v860_v47  ;;  %v1238_v41 = vadd.f32 %v1208_v27, %v1174_v26  ;;  %v793_v22 = vmul.f32 %v1770_v18, %v2060_v50 }
  0x52   : > { %v2161_v61 = vsel %vm555_vm0, %v574_v28, %v575_v57  ;;  %v829_v56 = vmul.f32 %v1772_v19, %v2097_v51  ;;  %v1128_v46 = vadd.f32 %v1098_v25, %v1064_v40  ;;  %v897_v49 = vmul.f32 %v1774_v20, %v2094_v10 }
  0x53   : > { %1406 = vst.msk [vmem:[%s1871_s7 + $0x48] sm:$0xff] %vm1396_vm2, %v1373_v55  ;;  %v966_v0 = vadd.f32 %v1823_v48, %v928_v59  ;;  %v1001_v13 = vmul.f32 %v1787_v30, %v2033_v38  ;;  %v1302_v15 = vadd.f32 %v1272_v16, %v1238_v41  ;;  %v1035_v53 = vmul.f32 %v1799_v35, %v1996_v44 }
  0x54   : > { %v861_v36 = vadd.f32 %v829_v56, %v793_v22  ;;  %v1099_v32 = vmul.f32 %v1806_v39, %v2030_v1  ;;  %v1175_v34 = vmul.f32 %v1811_v42, %v2161_v61  ;;  %v1209_v17 = vmul.f32 %v1813_v43, %v2124_v58 }
  0x55   : > { %v1342_v28 = vadd.f32 %v1128_v46, %v966_v0  ;;  %v1273_v38 = vmul.f32 %v1792_v31, %v2158_v24  ;;  %v1065_v33 = vadd.f32 %v1035_v53, %v1001_v13  ;;  %v577_v44 = vrot.slane %v2175_v52, 7 }
  0x56   : > { %v929_v62 = vadd.f32 %v897_v49, %v861_v36  ;;  %v674_v5 = vrot.slane %v2175_v52, 1  ;;  %v1239_v8 = vadd.f32 %v1209_v17, %v1175_v34  ;;  %v675_v37 = vrot.slane %v2188_v2, 1  ;;  %v2239_v34 = vld [vmem:[%s1759_s25 + $0x80] sm:$0xff] }
  0x57   : > { %v1374_v1 = vadd.f32 %v1342_v28, %v1302_v15  ;;  %v794_v11 = vmul.f32 %v1770_v18, %v2111_v45  ;;  %v1129_v21 = vadd.f32 %v1099_v32, %v1065_v33  ;;  %v2197_v23 = vsel %vm555_vm0, 0.0, %v577_v44 }
  0x58   : > { %v967_v14 = vadd.f32 %v1823_v48, %v929_v62  ;;  %v830_v47 = vmul.f32 %v1772_v19, %v2133_v9  ;;  %v1303_v54 = vadd.f32 %v1273_v38, %v1239_v8  ;;  %v2204_v25 = vsel %vm652_vm1, %v674_v5, %v675_v37 }
  0x59   : > { %1407 = vst.msk [vmem:[%s1871_s7 + $0x50] sm:$0xff] %vm1396_vm2, %v1374_v1  ;;  %v898_v26 = vmul.f32 %v1774_v20, %v2140_v12  ;;  %v1002_v27 = vmul.f32 %v1787_v30, %v2069_v63  ;;  %v1036_v55 = vmul.f32 %v1799_v35, %v2047_v29  ;;  %v1100_v59 = vmul.f32 %v1806_v39, %v2076_v4 }
  0x5a   : > { %v1343_v16 = vadd.f32 %v1129_v21, %v967_v14  ;;  %v862_v57 = vadd.f32 %v830_v47, %v794_v11  ;;  %v1176_v40 = vmul.f32 %v1811_v42, %v2197_v23  ;;  %v1210_v41 = vmul.f32 %v1813_v43, %v2175_v52  ;;  %v2252_v11 = vld [vmem:[%s1759_s25 + $0x88] sm:$0xff] }
  0x5b   : > { %v1274_v22 = vmul.f32 %v1792_v31, %v2204_v25  ;;  %v578_v63 = vrot.slane %v2188_v2, 7  ;;  %v1066_v46 = vadd.f32 %v1036_v55, %v1002_v27  ;;  %v2222_v29 = vsel %vm652_vm1, %v675_v37, 0.0 }
  0x5c   : > { %v1375_v56 = vadd.f32 %v1343_v16, %v1303_v54  ;;  %v930_v0 = vadd.f32 %v898_v26, %v862_v57  ;;  %v1240_v49 = vadd.f32 %v1210_v41, %v1176_v40  ;;  %v795_v13 = vmul.f32 %v1770_v18, %v2124_v58 }
  0x5d   : > { %v2225_v4 = vsel %vm555_vm0, %v577_v44, %v578_v63  ;;  %v831_v15 = vmul.f32 %v1772_v19, %v2161_v61  ;;  %v1130_v53 = vadd.f32 %v1100_v59, %v1066_v46  ;;  %v899_v32 = vmul.f32 %v1774_v20, %v2158_v24 }
  0x5e   : > { %1408 = vst.msk [vmem:[%s1871_s7 + $0x58] sm:$0xff] %vm1396_vm2, %v1375_v56  ;;  %v968_v36 = vadd.f32 %v1823_v48, %v930_v0  ;;  %v1003_v28 = vmul.f32 %v1787_v30, %v2097_v51  ;;  %v1304_v17 = vadd.f32 %v1274_v22, %v1240_v49  ;;  %v1037_v62 = vmul.f32 %v1799_v35, %v2060_v50 }
  0x5f   : > { %v863_v38 = vadd.f32 %v831_v15, %v795_v13  ;;  %v1101_v33 = vmul.f32 %v1806_v39, %v2094_v10  ;;  %v1177_v5 = vmul.f32 %v1811_v42, %v2225_v4  ;;  %v1211_v1 = vmul.f32 %v1813_v43, %v2188_v2 }
  0x60   : > { %v1344_v44 = vadd.f32 %v1130_v53, %v968_v36  ;;  %v1275_v51 = vmul.f32 %v1792_v31, %v2222_v29  ;;  %v1067_v37 = vadd.f32 %v1037_v62, %v1003_v28  ;;  %v580_v50 = vrot.slane %v2239_v34, 7 }
  0x61   : > { %v931_v8 = vadd.f32 %v899_v32, %v863_v38  ;;  %v677_v14 = vrot.slane %v2239_v34, 1  ;;  %v1241_v21 = vadd.f32 %v1211_v1, %v1177_v5  ;;  %v678_v47 = vrot.slane %v2252_v11, 1  ;;  %v2303_v5 = vld [vmem:[%s1759_s25 + $0x90] sm:$0xff] }
  0x62   : > { %v1376_v10 = vadd.f32 %v1344_v44, %v1304_v17  ;;  %v796_v54 = vmul.f32 %v1770_v18, %v2175_v52  ;;  %v1131_v27 = vadd.f32 %v1101_v33, %v1067_v37  ;;  %v2261_v16 = vsel %vm555_vm0, 0.0, %v580_v50 }
  0x63   : > { %v969_v26 = vadd.f32 %v1823_v48, %v931_v8  ;;  %v832_v57 = vmul.f32 %v1772_v19, %v2197_v23  ;;  %v1305_v55 = vadd.f32 %v1275_v51, %v1241_v21  ;;  %v2268_v59 = vsel %vm652_vm1, %v677_v14, %v678_v47 }
  0x64   : > { %1409 = vst.msk [vmem:[%s1871_s7 + $0x60] sm:$0xff] %vm1396_vm2, %v1376_v10  ;;  %v900_v40 = vmul.f32 %v1774_v20, %v2204_v25  ;;  %v1004_v41 = vmul.f32 %v1787_v30, %v2133_v9  ;;  %v1038_v56 = vmul.f32 %v1799_v35, %v2111_v45  ;;  %v1102_v0 = vmul.f32 %v1806_v39, %v2140_v12 }
  0x65   : > { %v1345_v22 = vadd.f32 %v1131_v27, %v969_v26  ;;  %v864_v63 = vadd.f32 %v832_v57, %v796_v54  ;;  %v1178_v46 = vmul.f32 %v1811_v42, %v2261_v16  ;;  %v1212_v49 = vmul.f32 %v1813_v43, %v2239_v34  ;;  %v2316_v54 = vld [vmem:[%s1759_s25 + $0x98] sm:$0xff] }
  0x66   : > { %v1276_v13 = vmul.f32 %v1792_v31, %v2268_v59  ;;  %v581_v9 = vrot.slane %v2252_v11, 7  ;;  %v1068_v53 = vadd.f32 %v1038_v56, %v1004_v41  ;;  %v2286_v45 = vsel %vm652_vm1, %v678_v47, 0.0 }
  0x67   : > { %v1377_v15 = vadd.f32 %v1345_v22, %v1305_v55  ;;  %v932_v36 = vadd.f32 %v900_v40, %v864_v63  ;;  %v1242_v32 = vadd.f32 %v1212_v49, %v1178_v46  ;;  %v797_v28 = vmul.f32 %v1770_v18, %v2188_v2 }
  0x68   : > { %v2289_v12 = vsel %vm555_vm0, %v580_v50, %v581_v9  ;;  %v833_v17 = vmul.f32 %v1772_v19, %v2225_v4  ;;  %v1132_v62 = vadd.f32 %v1102_v0, %v1068_v53  ;;  %v901_v33 = vmul.f32 %v1774_v20, %v2222_v29 }
  0x69   : > { %1410 = vst.msk [vmem:[%s1871_s7 + $0x68] sm:$0xff] %vm1396_vm2, %v1377_v15  ;;  %v970_v38 = vadd.f32 %v1823_v48, %v932_v36  ;;  %v1005_v44 = vmul.f32 %v1787_v30, %v2161_v61  ;;  %v1306_v1 = vadd.f32 %v1276_v13, %v1242_v32  ;;  %v1039_v8 = vmul.f32 %v1799_v35, %v2124_v58 }
  0x6a   : > { %v865_v51 = vadd.f32 %v833_v17, %v797_v28  ;;  %v1103_v37 = vmul.f32 %v1806_v39, %v2158_v24  ;;  %v1179_v14 = vmul.f32 %v1811_v42, %v2289_v12  ;;  %v1213_v10 = vmul.f32 %v1813_v43, %v2252_v11 }
  0x6b   : > { %v1346_v50 = vadd.f32 %v1132_v62, %v970_v38  ;;  %v1277_v61 = vmul.f32 %v1792_v31, %v2286_v45  ;;  %v1069_v47 = vadd.f32 %v1039_v8, %v1005_v44  ;;  %v583_v58 = vrot.slane %v2303_v5, 7 }
  0x6c   : > { %v933_v21 = vadd.f32 %v901_v33, %v865_v51  ;;  %v680_v26 = vrot.slane %v2303_v5, 1  ;;  %v1243_v27 = vadd.f32 %v1213_v10, %v1179_v14  ;;  %v681_v57 = vrot.slane %v2316_v54, 1  ;;  %v2367_v14 = vld [vmem:[%s1759_s25 + $0xa0] sm:$0xff] }
  0x6d   : > { %v1378_v24 = vadd.f32 %v1346_v50, %v1306_v1  ;;  %v798_v55 = vmul.f32 %v1770_v18, %v2239_v34  ;;  %v1133_v41 = vadd.f32 %v1103_v37, %v1069_v47  ;;  %v2325_v22 = vsel %vm555_vm0, 0.0, %v583_v58 }
  0x6e   : > { %v971_v40 = vadd.f32 %v1823_v48, %v933_v21  ;;  %v834_v63 = vmul.f32 %v1772_v19, %v2261_v16  ;;  %v1307_v56 = vadd.f32 %v1277_v61, %v1243_v27  ;;  %v2332_v0 = vsel %vm652_vm1, %v680_v26, %v681_v57 }
  0x6f   : > { %1411 = vst.msk [vmem:[%s1871_s7 + $0x70] sm:$0xff] %vm1396_vm2, %v1378_v24  ;;  %v902_v46 = vmul.f32 %v1774_v20, %v2268_v59  ;;  %v1006_v49 = vmul.f32 %v1787_v30, %v2197_v23  ;;  %v1040_v15 = vmul.f32 %v1799_v35, %v2175_v52  ;;  %v1104_v36 = vmul.f32 %v1806_v39, %v2204_v25 }
  0x70   : > { %v1347_v13 = vadd.f32 %v1133_v41, %v971_v40  ;;  %v866_v9 = vadd.f32 %v834_v63, %v798_v55  ;;  %v1180_v53 = vmul.f32 %v1811_v42, %v2325_v22  ;;  %v1214_v32 = vmul.f32 %v1813_v43, %v2303_v5  ;;  %v2380_v55 = vld [vmem:[%s1759_s25 + $0xa8] sm:$0xff] }
  0x71   : > { %v1278_v28 = vmul.f32 %v1792_v31, %v2332_v0  ;;  %v584_v23 = vrot.slane %v2316_v54, 7  ;;  %v1070_v62 = vadd.f32 %v1040_v15, %v1006_v49  ;;  %v2350_v52 = vsel %vm652_vm1, %v681_v57, 0.0 }
  0x72   : > { %v1379_v17 = vadd.f32 %v1347_v13, %v1307_v56  ;;  %v934_v38 = vadd.f32 %v902_v46, %v866_v9  ;;  %v1244_v33 = vadd.f32 %v1214_v32, %v1180_v53  ;;  %v799_v44 = vmul.f32 %v1770_v18, %v2252_v11 }
  0x73   : > { %v2353_v25 = vsel %vm555_vm0, %v583_v58, %v584_v23  ;;  %v835_v1 = vmul.f32 %v1772_v19, %v2289_v12  ;;  %v1134_v8 = vadd.f32 %v1104_v36, %v1070_v62  ;;  %v903_v37 = vmul.f32 %v1774_v20, %v2286_v45 }
  0x74   : > { %1412 = vst.msk [vmem:[%s1871_s7 + $0x78] sm:$0xff] %vm1396_vm2, %v1379_v17  ;;  %v972_v51 = vadd.f32 %v1823_v48, %v934_v38  ;;  %v1007_v50 = vmul.f32 %v1787_v30, %v2225_v4  ;;  %v1308_v10 = vadd.f32 %v1278_v28, %v1244_v33  ;;  %v1041_v21 = vmul.f32 %v1799_v35, %v2188_v2 }
  0x75   : > { %v867_v61 = vadd.f32 %v835_v1, %v799_v44  ;;  %v1105_v47 = vmul.f32 %v1806_v39, %v2222_v29  ;;  %v1181_v26 = vmul.f32 %v1811_v42, %v2353_v25  ;;  %v1215_v24 = vmul.f32 %v1813_v43, %v2316_v54 }
  0x76   : > { %v1348_v58 = vadd.f32 %v1134_v8, %v972_v51  ;;  %v1279_v4 = vmul.f32 %v1792_v31, %v2350_v52  ;;  %v1071_v57 = vadd.f32 %v1041_v21, %v1007_v50  ;;  %v586_v2 = vrot.slane %v2367_v14, 7 }
  0x77   : > { %v935_v27 = vadd.f32 %v903_v37, %v867_v61  ;;  %v683_v40 = vrot.slane %v2367_v14, 1  ;;  %v1245_v41 = vadd.f32 %v1215_v24, %v1181_v26  ;;  %v684_v63 = vrot.slane %v2380_v55, 1  ;;  %v2431_v26 = vld [vmem:[%s1759_s25 + $0xb0] sm:$0xff] }
  0x78   : > { %v1380_v29 = vadd.f32 %v1348_v58, %v1308_v10  ;;  %v800_v56 = vmul.f32 %v1770_v18, %v2303_v5  ;;  %v1135_v49 = vadd.f32 %v1105_v47, %v1071_v57  ;;  %v2389_v13 = vsel %vm555_vm0, 0.0, %v586_v2 }
  0x79   : > { %v973_v46 = vadd.f32 %v1823_v48, %v935_v27  ;;  %v836_v9 = vmul.f32 %v1772_v19, %v2325_v22  ;;  %v1309_v15 = vadd.f32 %v1279_v4, %v1245_v41  ;;  %v2396_v36 = vsel %vm652_vm1, %v683_v40, %v684_v63 }
  0x7a   : > { %1413 = vst.msk [vmem:[%s1871_s7 + $0x80] sm:$0xff] %vm1396_vm2, %v1380_v29  ;;  %v904_v53 = vmul.f32 %v1774_v20, %v2332_v0  ;;  %v1008_v32 = vmul.f32 %v1787_v30, %v2261_v16  ;;  %v1042_v17 = vmul.f32 %v1799_v35, %v2239_v34  ;;  %v1106_v38 = vmul.f32 %v1806_v39, %v2268_v59 }
  0x7b   : > { %v1349_v28 = vadd.f32 %v1135_v49, %v973_v46  ;;  %v868_v23 = vadd.f32 %v836_v9, %v800_v56  ;;  %v1182_v62 = vmul.f32 %v1811_v42, %v2389_v13  ;;  %v1216_v33 = vmul.f32 %v1813_v43, %v2367_v14  ;;  %v2444_v56 = vld [vmem:[%s1759_s25 + $0xb8] sm:$0xff] }
  0x7c   : > { %v1280_v44 = vmul.f32 %v1792_v31, %v2396_v36  ;;  %v587_v16 = vrot.slane %v2380_v55, 7  ;;  %v1072_v8 = vadd.f32 %v1042_v17, %v1008_v32  ;;  %v2414_v34 = vsel %vm652_vm1, %v684_v63, 0.0 }
  0x7d   : > { %v1381_v1 = vadd.f32 %v1349_v28, %v1309_v15  ;;  %v936_v51 = vadd.f32 %v904_v53, %v868_v23  ;;  %v1246_v37 = vadd.f32 %v1216_v33, %v1182_v62  ;;  %v801_v50 = vmul.f32 %v1770_v18, %v2316_v54 }
  0x7e   : > { %v2417_v59 = vsel %vm555_vm0, %v586_v2, %v587_v16  ;;  %v837_v10 = vmul.f32 %v1772_v19, %v2353_v25  ;;  %v1136_v21 = vadd.f32 %v1106_v38, %v1072_v8  ;;  %v905_v47 = vmul.f32 %v1774_v20, %v2350_v52 }
  0x7f   : > { %1414 = vst.msk [vmem:[%s1871_s7 + $0x88] sm:$0xff] %vm1396_vm2, %v1381_v1  ;;  %v974_v61 = vadd.f32 %v1823_v48, %v936_v51  ;;  %v1009_v58 = vmul.f32 %v1787_v30, %v2289_v12  ;;  %v1310_v24 = vadd.f32 %v1280_v44, %v1246_v37  ;;  %v1043_v27 = vmul.f32 %v1799_v35, %v2252_v11 }
  0x80   : > { %v869_v4 = vadd.f32 %v837_v10, %v801_v50  ;;  %v1107_v57 = vmul.f32 %v1806_v39, %v2286_v45  ;;  %v1183_v40 = vmul.f32 %v1811_v42, %v2417_v59  ;;  %v1217_v29 = vmul.f32 %v1813_v43, %v2380_v55 }
  0x81   : > { %v1350_v2 = vadd.f32 %v1136_v21, %v974_v61  ;;  %v1281_v12 = vmul.f32 %v1792_v31, %v2414_v34  ;;  %v1073_v63 = vadd.f32 %v1043_v27, %v1009_v58  ;;  %v589_v11 = vrot.slane %v2431_v26, 7 }
  0x82   : > { %v937_v41 = vadd.f32 %v905_v47, %v869_v4  ;;  %v686_v46 = vrot.slane %v2431_v26, 1  ;;  %v1247_v49 = vadd.f32 %v1217_v29, %v1183_v40  ;;  %v687_v9 = vrot.slane %v2444_v56, 1 }
  0x83   : > { %v1382_v45 = vadd.f32 %v1350_v2, %v1310_v24  ;;  %v802_v15 = vmul.f32 %v1770_v18, %v2367_v14  ;;  %v1137_v32 = vadd.f32 %v1107_v57, %v1073_v63  ;;  %v2453_v28 = vsel %vm555_vm0, 0.0, %v589_v11  ;;  %v2495_v2 = vld [vmem:[%s1759_s25 + $0xc0] sm:$0xff] }
  0x84   : > { %v975_v53 = vadd.f32 %v1823_v48, %v937_v41  ;;  %v838_v23 = vmul.f32 %v1772_v19, %v2389_v13  ;;  %v1311_v17 = vadd.f32 %v1281_v12, %v1247_v49  ;;  %v2460_v38 = vsel %vm652_vm1, %v686_v46, %v687_v9  ;;  %v2513_v49 = vld [vmem:[%s1759_s25 + $0xc8] sm:$0xff] }
  0x85   : > { %1415 = vst.msk [vmem:[%s1871_s7 + $0x90] sm:$0xff] %vm1396_vm2, %v1382_v45  ;;  %v906_v62 = vmul.f32 %v1774_v20, %v2396_v36  ;;  %v1010_v33 = vmul.f32 %v1787_v30, %v2325_v22  ;;  %v1044_v1 = vmul.f32 %v1799_v35, %v2303_v5  ;;  %v1108_v51 = vmul.f32 %v1806_v39, %v2332_v0 }
  0x86   : > { %v1351_v44 = vadd.f32 %v1137_v32, %v975_v53  ;;  %v870_v16 = vadd.f32 %v838_v23, %v802_v15  ;;  %v1184_v8 = vmul.f32 %v1811_v42, %v2453_v28  ;;  %v1218_v37 = vmul.f32 %v1813_v43, %v2431_v26 }
  0x87   : > { %v1282_v50 = vmul.f32 %v1792_v31, %v2460_v38  ;;  %v590_v22 = vrot.slane %v2444_v56, 7  ;;  %v1074_v21 = vadd.f32 %v1044_v1, %v1010_v33  ;;  %v2478_v5 = vsel %vm652_vm1, %v687_v9, 0.0 }
  0x88   : > { %v1383_v10 = vadd.f32 %v1351_v44, %v1311_v17  ;;  %v938_v61 = vadd.f32 %v906_v62, %v870_v16  ;;  %v1248_v47 = vadd.f32 %v1218_v37, %v1184_v8  ;;  %v803_v58 = vmul.f32 %v1770_v18, %v2380_v55  ;;  %v2523_v17 = vld [vmem:[%s2805_s4] ss:$0 sm:$0xff] }
  0x89   : > { %v2481_v0 = vsel %vm555_vm0, %v589_v11, %v590_v22  ;;  %v839_v24 = vmul.f32 %v1772_v19, %v2417_v59  ;;  %v1138_v4 = vadd.f32 %v1108_v51, %v1074_v21  ;;  %v907_v27 = vmul.f32 %v1774_v20, %v2414_v34 }
  0x8a   : > { %1416 = vst.msk [vmem:[%s1871_s7 + $0x98] sm:$0xff] %vm1396_vm2, %v1383_v10  ;;  %v976_v31 = vadd.f32 %v1823_v48, %v938_v61  ;;  %v1011_v57 = vmul.f32 %v1787_v30, %v2353_v25  ;;  %v1312_v40 = vadd.f32 %v1282_v50, %v1248_v47  ;;  %v1045_v12 = vmul.f32 %v1799_v35, %v2316_v54  ;;  %v2508_v25 = vld [vmem:[%s2804_s3 + $0x8] ss:$0 sm:$0xff] }
  0x8b   : > { %v871_v29 = vadd.f32 %v839_v24, %v803_v58  ;;  %v1109_v41 = vmul.f32 %v1806_v39, %v2350_v52  ;;  %v1185_v48 = vmul.f32 %v1811_v42, %v2481_v0  ;;  %v1219_v11 = vmul.f32 %v1813_v43, %v2444_v56 }
  0x8c   : > { %v1352_v63 = vadd.f32 %v1138_v4, %v976_v31  ;;  %v1283_v46 = vmul.f32 %v2508_v25, %v2478_v5  ;;  %v1075_v45 = vadd.f32 %v1045_v12, %v1011_v57  ;;  %v592_v52 = vrot.slane %v2495_v2, 7 }
  0x8d   : > { %v939_v54 = vadd.f32 %v907_v27, %v871_v29  ;;  %v689_v9 = vrot.slane %v2495_v2, 1  ;;  %v1249_v53 = vadd.f32 %v1219_v11, %v1185_v48  ;;  %v690_v32 = vrot.slane %v2513_v49, 1  ;;  %v2569_v48 = vld [vmem:[%s1759_s25 + $0xd0] sm:$0xff] }
  0x8e   : > { %v1384_v15 = vadd.f32 %v1352_v63, %v1312_v40  ;;  %v804_v23 = vmul.f32 %v1770_v18, %v2431_v26  ;;  %v1139_v33 = vadd.f32 %v1109_v41, %v1075_v45  ;;  %v2527_v44 = vsel %vm555_vm0, 0.0, %v592_v52 }
  0x8f   : > { %v977_v62 = vadd.f32 %v2523_v17, %v939_v54  ;;  %v840_v16 = vmul.f32 %v1772_v19, %v2453_v28  ;;  %v1313_v1 = vadd.f32 %v1283_v46, %v1249_v53  ;;  %v2534_v51 = vsel %vm652_vm1, %v689_v9, %v690_v32 }
  0x90   : > { %1417 = vst.msk [vmem:[%s1871_s7 + $0xa0] sm:$0xff] %vm1396_vm2, %v1384_v15  ;;  %v908_v8 = vmul.f32 %v1774_v20, %v2460_v38  ;;  %v1012_v37 = vmul.f32 %v1787_v30, %v2389_v13  ;;  %v1046_v10 = vmul.f32 %v1799_v35, %v2367_v14  ;;  %v1110_v61 = vmul.f32 %v1806_v39, %v2396_v36 }
  0x91   : > { %v1353_v50 = vadd.f32 %v1139_v33, %v977_v62  ;;  %v872_v22 = vadd.f32 %v840_v16, %v804_v23  ;;  %v1186_v21 = vmul.f32 %v1811_v42, %v2527_v44  ;;  %v1220_v47 = vmul.f32 %v1813_v43, %v2495_v2  ;;  %v2582_v23 = vld [vmem:[%s1759_s25 + $0xd8] sm:$0xff] }
  0x92   : > { %v1284_v58 = vmul.f32 %v2508_v25, %v2534_v51  ;;  %v593_v13 = vrot.slane %v2513_v49, 7  ;;  %v1076_v4 = vadd.f32 %v1046_v10, %v1012_v37  ;;  %v2552_v14 = vsel %vm652_vm1, %v690_v32, 0.0 }
  0x93   : > { %v1385_v24 = vadd.f32 %v1353_v50, %v1313_v1  ;;  %v940_v31 = vadd.f32 %v908_v8, %v872_v22  ;;  %v1250_v27 = vadd.f32 %v1220_v47, %v1186_v21  ;;  %v805_v57 = vmul.f32 %v1770_v18, %v2444_v56 }
  0x94   : > { %v2555_v36 = vsel %vm555_vm0, %v592_v52, %v593_v13  ;;  %v841_v40 = vmul.f32 %v1772_v19, %v2481_v0  ;;  %v1140_v12 = vadd.f32 %v1110_v61, %v1076_v4  ;;  %v909_v41 = vmul.f32 %v1774_v20, %v2478_v5 }
  0x95   : > { %1418 = vst.msk [vmem:[%s1871_s7 + $0xa8] sm:$0xff] %vm1396_vm2, %v1385_v24  ;;  %v978_v29 = vadd.f32 %v2523_v17, %v940_v31  ;;  %v1013_v63 = vmul.f32 %v1787_v30, %v2417_v59  ;;  %v1314_v11 = vadd.f32 %v1284_v58, %v1250_v27  ;;  %v1047_v54 = vmul.f32 %v1799_v35, %v2380_v55 }
  0x96   : > { %v873_v46 = vadd.f32 %v841_v40, %v805_v57  ;;  %v1111_v45 = vmul.f32 %v1806_v39, %v2414_v34  ;;  %v1187_v9 = vmul.f32 %v1811_v42, %v2555_v36  ;;  %v1221_v15 = vmul.f32 %v1813_v43, %v2513_v49 }
  0x97   : > { %v1354_v52 = vadd.f32 %v1140_v12, %v978_v29  ;;  %v1285_v59 = vmul.f32 %v2508_v25, %v2552_v14  ;;  %v1077_v32 = vadd.f32 %v1047_v54, %v1013_v63  ;;  %v595_v55 = vrot.slane %v2569_v48, 7 }
  0x98   : > { %v941_v53 = vadd.f32 %v909_v41, %v873_v46  ;;  %v692_v62 = vrot.slane %v2569_v48, 1  ;;  %v1251_v33 = vadd.f32 %v1221_v15, %v1187_v9  ;;  %v693_v16 = vrot.slane %v2582_v23, 1  ;;  %v2633_v9 = vld [vmem:[%s1759_s25 + $0xe0] sm:$0xff] }
  0x99   : > { %v1386_v34 = vadd.f32 %v1354_v52, %v1314_v11  ;;  %v806_v1 = vmul.f32 %v1770_v18, %v2495_v2  ;;  %v1141_v37 = vadd.f32 %v1111_v45, %v1077_v32  ;;  %v2591_v50 = vsel %vm555_vm0, 0.0, %v595_v55 }
  0x9a   : > { %v979_v8 = vadd.f32 %v2523_v17, %v941_v53  ;;  %v842_v22 = vmul.f32 %v1772_v19, %v2527_v44  ;;  %v1315_v10 = vadd.f32 %v1285_v59, %v1251_v33  ;;  %v2598_v61 = vsel %vm652_vm1, %v692_v62, %v693_v16 }
  0x9b   : > { %1419 = vst.msk [vmem:[%s1871_s7 + $0xb0] sm:$0xff] %vm1396_vm2, %v1386_v34  ;;  %v910_v21 = vmul.f32 %v1774_v20, %v2534_v51  ;;  %v1014_v47 = vmul.f32 %v1787_v30, %v2453_v28  ;;  %v1048_v24 = vmul.f32 %v1799_v35, %v2431_v26  ;;  %v1112_v31 = vmul.f32 %v1806_v39, %v2460_v38 }
  0x9c   : > { %v1355_v58 = vadd.f32 %v1141_v37, %v979_v8  ;;  %v874_v13 = vadd.f32 %v842_v22, %v806_v1  ;;  %v1188_v4 = vmul.f32 %v1811_v42, %v2591_v50  ;;  %v1222_v27 = vmul.f32 %v1813_v43, %v2569_v48  ;;  %v2646_v1 = vld [vmem:[%s1759_s25 + $0xe8] sm:$0xff] }
  0x9d   : > { %v1286_v57 = vmul.f32 %v2508_v25, %v2598_v61  ;;  %v596_v28 = vrot.slane %v2582_v23, 7  ;;  %v1078_v12 = vadd.f32 %v1048_v24, %v1014_v47  ;;  %v2616_v26 = vsel %vm652_vm1, %v693_v16, 0.0 }
  0x9e   : > { %v1387_v40 = vadd.f32 %v1355_v58, %v1315_v10  ;;  %v942_v29 = vadd.f32 %v910_v21, %v874_v13  ;;  %v1252_v41 = vadd.f32 %v1222_v27, %v1188_v4  ;;  %v807_v63 = vmul.f32 %v1770_v18, %v2513_v49 }
  0x9f   : > { %v2619_v38 = vsel %vm555_vm0, %v595_v55, %v596_v28  ;;  %v843_v11 = vmul.f32 %v1772_v19, %v2555_v36  ;;  %v1142_v54 = vadd.f32 %v1112_v31, %v1078_v12  ;;  %v911_v45 = vmul.f32 %v1774_v20, %v2552_v14 }
  0xa0   : > { %1420 = vst.msk [vmem:[%s1871_s7 + $0xb8] sm:$0xff] %vm1396_vm2, %v1387_v40  ;;  %v980_v46 = vadd.f32 %v2523_v17, %v942_v29  ;;  %v1015_v52 = vmul.f32 %v1787_v30, %v2481_v0  ;;  %v1316_v15 = vadd.f32 %v1286_v57, %v1252_v41  ;;  %v1049_v53 = vmul.f32 %v1799_v35, %v2444_v56 }
  0xa1   : > { %v875_v59 = vadd.f32 %v843_v11, %v807_v63  ;;  %v1113_v32 = vmul.f32 %v1806_v39, %v2478_v5  ;;  %v1189_v62 = vmul.f32 %v1811_v42, %v2619_v38  ;;  %v1223_v34 = vmul.f32 %v1813_v43, %v2582_v23 }
  0xa2   : > { %v1356_v55 = vadd.f32 %v1142_v54, %v980_v46  ;;  %v1287_v0 = vmul.f32 %v2508_v25, %v2616_v26  ;;  %v1079_v16 = vadd.f32 %v1049_v53, %v1015_v52  ;;  %v598_v56 = vrot.slane %v2633_v9, 7 }
  0xa3   : > { %v943_v33 = vadd.f32 %v911_v45, %v875_v59  ;;  %v695_v8 = vrot.slane %v2633_v9, 1  ;;  %v1253_v37 = vadd.f32 %v1223_v34, %v1189_v62  ;;  %v696_v22 = vrot.slane %v2646_v1, 1  ;;  %v521_v62 = vld [vmem:[%s1759_s25 + $0xf0] sm:$0xff] }
  0xa4   : > { %v1388_v5 = vadd.f32 %v1356_v55, %v1316_v15  ;;  %v808_v10 = vmul.f32 %v1770_v18, %v2569_v48  ;;  %v1143_v47 = vadd.f32 %v1113_v32, %v1079_v16  ;;  %v2655_v58 = vsel %vm555_vm0, 0.0, %v598_v56 }
  0xa5   : > { %v981_v21 = vadd.f32 %v2523_v17, %v943_v33  ;;  %v844_v13 = vmul.f32 %v1772_v19, %v2591_v50  ;;  %v1317_v24 = vadd.f32 %v1287_v0, %v1253_v37  ;;  %v2662_v31 = vsel %vm652_vm1, %v695_v8, %v696_v22 }
  0xa6   : > { %1421 = vst.msk [vmem:[%s1871_s7 + $0xc0] sm:$0xff] %vm1396_vm2, %v1388_v5  ;;  %v912_v4 = vmul.f32 %v1774_v20, %v2598_v61  ;;  %v1016_v27 = vmul.f32 %v1787_v30, %v2527_v44  ;;  %v1050_v40 = vmul.f32 %v1799_v35, %v2495_v2  ;;  %v1114_v29 = vmul.f32 %v1806_v39, %v2534_v51 }
  0xa7   : > { %v1357_v57 = vadd.f32 %v1143_v47, %v981_v21  ;;  %v876_v28 = vadd.f32 %v844_v13, %v808_v10  ;;  %v1190_v12 = vmul.f32 %v1811_v42, %v2655_v58  ;;  %v1224_v41 = vmul.f32 %v1813_v43, %v2633_v9  ;;  %v2708_v10 = vld [vmem:[%s1759_s25 + $0xf8] sm:$0xff] }
  0xa8   : > { %v1288_v63 = vmul.f32 %v2508_v25, %v2662_v31  ;;  %v599_v44 = vrot.slane %v2646_v1, 7  ;;  %v1080_v54 = vadd.f32 %v1050_v40, %v1016_v27  ;;  %v2680_v2 = vsel %vm652_vm1, %v696_v22, 0.0 }
  0xa9   : > { %v1389_v11 = vadd.f32 %v1357_v57, %v1317_v24  ;;  %v944_v46 = vadd.f32 %v912_v4, %v876_v28  ;;  %v1254_v45 = vadd.f32 %v1224_v41, %v1190_v12  ;;  %v809_v52 = vmul.f32 %v1770_v18, %v2582_v23 }
  0xaa   : > { %v2683_v51 = vsel %vm555_vm0, %v598_v56, %v599_v44  ;;  %v845_v15 = vmul.f32 %v1772_v19, %v2619_v38  ;;  %v1144_v53 = vadd.f32 %v1114_v29, %v1080_v54  ;;  %v913_v32 = vmul.f32 %v1774_v20, %v2616_v26 }
  0xab   : > { %1422 = vst.msk [vmem:[%s1871_s7 + $0xc8] sm:$0xff] %vm1396_vm2, %v1389_v11  ;;  %v982_v59 = vadd.f32 %v2523_v17, %v944_v46  ;;  %v1017_v55 = vmul.f32 %v1787_v30, %v2555_v36  ;;  %v1318_v34 = vadd.f32 %v1288_v63, %v1254_v45  ;;  %v1051_v33 = vmul.f32 %v1799_v35, %v2513_v49 }
  0xac   : > { %v877_v0 = vadd.f32 %v845_v15, %v809_v52  ;;  %v1115_v16 = vmul.f32 %v1806_v39, %v2552_v14  ;;  %v1191_v8 = vmul.f32 %v1811_v42, %v2683_v51  ;;  %v1225_v5 = vmul.f32 %v1813_v43, %v2646_v1 }
  0xad   : > { %v1358_v56 = vadd.f32 %v1144_v53, %v982_v59  ;;  %v1289_v36 = vmul.f32 %v2508_v25, %v2680_v2  ;;  %v1081_v22 = vadd.f32 %v1051_v33, %v1017_v55  ;;  %v601_v21 = vrot.slane %v521_v62, 7 }
  0xae   : > { %v945_v37 = vadd.f32 %v913_v32, %v877_v0  ;;  %v698_v49 = vrot.slane %v521_v62, 1  ;;  %v1255_v13 = vadd.f32 %v1225_v5, %v1191_v8  ;;  %v699_v14 = vrot.slane %v2708_v10, 1 }
  0xaf   : > { %v1390_v47 = vadd.f32 %v1358_v56, %v1318_v34  ;;  %v810_v24 = vmul.f32 %v1770_v18, %v2633_v9  ;;  %v1145_v27 = vadd.f32 %v1115_v16, %v1081_v22  ;;  %v651_v57 = vsel %vm555_vm0, 0.0, %v601_v21 }
  0xb0   : > { %v983_v4 = vadd.f32 %v2523_v17, %v945_v37  ;;  %v846_v28 = vmul.f32 %v1772_v19, %v2655_v58  ;;  %v1319_v40 = vadd.f32 %v1289_v36, %v1255_v13  ;;  %v700_v29 = vsel %vm652_vm1, %v698_v49, %v699_v14 }
  0xb1   : > { %1423 = vst.msk [vmem:[%s1871_s7 + $0xd0] sm:$0xff] %vm1396_vm2, %v1390_v47  ;;  %v848_v12 = vmul.f32 %v1772_v19, %v651_v57  ;;  %v914_v41 = vmul.f32 %v1774_v20, %v2662_v31  ;;  %v916_v11 = vmul.f32 %v1774_v20, %v700_v29  ;;  %v1018_v46 = vmul.f32 %v1787_v30, %v2591_v50 }
  0xb2   : > { %v1359_v63 = vadd.f32 %v1145_v27, %v983_v4  ;;  %v878_v44 = vadd.f32 %v846_v28, %v810_v24  ;;  %v1052_v54 = vmul.f32 %v1799_v35, %v2569_v48  ;;  %v1116_v45 = vmul.f32 %v1806_v39, %v2598_v61 }
  0xb3   : > { %v1192_v52 = vmul.f32 %v1811_v42, %v651_v57  ;;  %v1226_v15 = vmul.f32 %v1813_v43, %v521_v62  ;;  %v1290_v32 = vmul.f32 %v2508_v25, %v700_v29  ;;  %v602_v55 = vrot.slane %v2708_v10, 7 }
  0xb4   : > { %v1391_v59 = vadd.f32 %v1359_v63, %v1319_v40  ;;  %v946_v53 = vadd.f32 %v914_v41, %v878_v44  ;;  %v1082_v34 = vadd.f32 %v1052_v54, %v1018_v46  ;;  %v748_v50 = vsel %vm652_vm1, %v699_v14, 0.0 }
  0xb5   : > { %v1256_v0 = vadd.f32 %v1226_v15, %v1192_v52  ;;  %v811_v48 = vmul.f32 %v1770_v18, %v2646_v1  ;;  %v603_v33 = vsel %vm555_vm0, %v601_v21, %v602_v55  ;;  %v847_v16 = vmul.f32 %v1772_v19, %v2683_v51 }
  0xb6   : > { %1424 = vst.msk [vmem:[%s1871_s7 + $0xd8] sm:$0xff] %vm1396_vm2, %v1391_v59  ;;  %v984_v61 = vadd.f32 %v2523_v17, %v946_v53  ;;  %v915_v56 = vmul.f32 %v1774_v20, %v2680_v2  ;;  %v1146_v8 = vadd.f32 %v1116_v45, %v1082_v34  ;;  %v849_v36 = vmul.f32 %v1772_v19, %v603_v33 }
  0xb7   : > { %v1320_v5 = vadd.f32 %v1290_v32, %v1256_v0  ;;  %v917_v37 = vmul.f32 %v1774_v20, %v748_v50  ;;  %v879_v22 = vadd.f32 %v847_v16, %v811_v48  ;;  %v1019_v49 = vmul.f32 %v1787_v30, %v2619_v38 }
  0xb8   : > { %v1053_v47 = vmul.f32 %v1799_v35, %v2582_v23  ;;  %v1117_v21 = vmul.f32 %v1806_v39, %v2616_v26  ;;  %v1360_v13 = vadd.f32 %v1146_v8, %v984_v61  ;;  %v1193_v14 = vmul.f32 %v1811_v42, %v603_v33 }
  0xb9   : > { %v1227_v24 = vmul.f32 %v1813_v43, %v2708_v10  ;;  %v1291_v19 = vmul.f32 %v2508_v25, %v748_v50  ;;  %v947_v20 = vadd.f32 %v915_v56, %v879_v22  ;;  %v812_v27 = vmul.f32 %v1770_v18, %v521_v62 }
  0xba   : > { %v1083_v4 = vadd.f32 %v1053_v47, %v1019_v49  ;;  %v1020_v38 = vmul.f32 %v1787_v30, %v2655_v58  ;;  %v1392_v23 = vadd.f32 %v1360_v13, %v1320_v5  ;;  %v1054_v26 = vmul.f32 %v1799_v35, %v2633_v9 }
  0xbb   : > { %v1257_v57 = vadd.f32 %v1227_v24, %v1193_v14  ;;  %v1118_v28 = vmul.f32 %v1806_v39, %v2662_v31  ;;  %v985_v40 = vadd.f32 %v2523_v17, %v947_v20  ;;  %v880_v41 = vadd.f32 %v848_v12, %v812_v27 }
  0xbc   : > { %v1147_v29 = vadd.f32 %v1117_v21, %v1083_v4  ;;  %v1322_v63 = vmul.f32 %v1811_v42, %v1752_v7  ;;  %1425 = vst.msk [vmem:[%s1871_s7 + $0xe0] sm:$0xff] %vm1396_vm2, %v1392_v23  ;;  %v1084_v44 = vadd.f32 %v1054_v26, %v1020_v38  ;;  %v1324_v58 = vmul.f32 0.0, %v1813_v43 }
  0xbd   : > { %v1321_v62 = vadd.f32 %v1291_v19, %v1257_v57  ;;  %v1328_v46 = vmul.f32 %v2508_v25, %v1747_v6  ;;  %v948_v54 = vadd.f32 %v916_v11, %v880_v41  ;;  %v813_v31 = vmul.f32 %v1770_v18, %v2708_v10 }
  0xbe   : > { %v1361_v9 = vadd.f32 %v1147_v29, %v985_v40  ;;  %v1021_v12 = vmul.f32 %v1787_v30, %v2683_v51  ;;  %v1148_v45 = vadd.f32 %v1118_v28, %v1084_v44  ;;  %v1326_v7 = vadd.f32 %v1324_v58, %v1322_v63 }
  0xbf   : > { %v1055_v52 = vmul.f32 %v1799_v35, %v2646_v1  ;;  %v1119_v43 = vmul.f32 %v1806_v39, %v2680_v2  ;;  %v986_v6 = vadd.f32 %v2523_v17, %v948_v54  ;;  %v881_v59 = vadd.f32 %v849_v36, %v813_v31 }
  0xc0   : > { %v1393_v15 = vadd.f32 %v1361_v9, %v1321_v62  ;;  %v1323_v18 = vmul.f32 %v1811_v42, %v1745_v3  ;;  %v1330_v10 = vadd.f32 %v1328_v46, %v1326_v7  ;;  %v1329_v30 = vmul.f32 %v2508_v25, %v1842_v60 }
  0xc1   : > { %v1085_v11 = vadd.f32 %v1055_v52, %v1021_v12  ;;  %v1362_v35 = vadd.f32 %v1148_v45, %v986_v6  ;;  %v949_v1 = vadd.f32 %v917_v37, %v881_v59 }
  0xc2   : > { %1426 = vst.msk [vmem:[%s1871_s7 + $0xe8] sm:$0xff] %vm1396_vm2, %v1393_v15  ;;  %v1327_v51 = vadd.f32 %v1324_v58, %v1323_v18 }
  0xc3   : > { %v1149_v39 = vadd.f32 %v1119_v43, %v1085_v11  ;;  %v1394_v2 = vadd.f32 %v1362_v35, %v1330_v10  ;;  %v987_v53 = vadd.f32 %v2523_v17, %v949_v1 }
  0xc4   : > { %v1331_v32 = vadd.f32 %v1329_v30, %v1327_v51 }
  0xc5   : > { %1427 = vst.msk [vmem:[%s1871_s7 + $0xf0] sm:$0xff] %vm1396_vm2, %v1394_v2  ;;  %v1363_v55 = vadd.f32 %v1149_v39, %v987_v53 }
  0xc7   : > { %v1395_v34 = vadd.f32 %v1363_v55, %v1331_v32 }
  0xc9   : > { %1428 = vst.msk [vmem:[%s1871_s7 + $0xf8] sm:$0xff] %vm1396_vm2, %v1395_v34 }
  0xca PF: > { %s15_s20 = sadd.s32 1, %s1689_s20   ;;  %s2807_s18 = smov %s1685_s19 }
  0xcb   : > { %p12_p5 = scmp.ge.s32.totalorder %s15_s20, 4   ;;  %s2808_s19 = smov %s2810_s1 }
  0xcd   :  { %14 = sbr.rel (!%p12_p5) target bundleno = 2 (0x2), region = 82 }

</bundles_post_ra>
